<compile_context>
chip_gen: v7x
topology: tpu7x:2x2x1
jax: 0.10.0
libtpu: 0.0.40
codegen_flags: <defaults>
</compile_context>

<pallas_src>
import functools

import jax
import jax.numpy as jnp
from jax.experimental import pallas as pl
from jax.experimental.pallas import tpu as pltpu


# ----------------------------------------------------------------------------
# One-time parameter preparation (NOT in the per-call jitted path).
# Packs every weight/bias into a single (rows, 4H) f32 slab with each piece's
# row offset aligned to the 8-sublane granule.
# ----------------------------------------------------------------------------
def prepare_params(params, *, input_dim, hidden_dim, n_layers, out_dim=26):
    H = hidden_dim
    G = 4 * H                      # slab lane width (128 for H=32) == FC pad
    assert G >= out_dim

    blocks, offsets = [], {}
    row = 0

    def add(name, arr):
        nonlocal row
        arr = jnp.asarray(arr, jnp.float32)
        r, c = arr.shape
        r_pad = ((r + 7) // 8) * 8
        arr = jnp.pad(arr, ((0, r_pad - r), (0, G - c)))
        offsets[name] = (row, r)
        blocks.append(arr)
        row += r_pad

    # layer 0: input weights (transposed), folded bias, recurrent weights
    add("w_ih_0", params["w_ih_0"].T)                                # (Din, 4H)
    add("b_0", (params["b_ih_0"] + params["b_hh_0"]).reshape(1, -1))  # (1, 4H)
    add("w_hh_0", params["w_hh_0"].T)                                # (H, 4H)
    # upper layers (un-fused ih / hh weights + folded bias)
    for l in range(1, n_layers):
        add(f"w_ih_{l}", params[f"w_ih_{l}"].T)                      # (H, 4H)
        add(f"w_hh_{l}", params[f"w_hh_{l}"].T)                      # (H, 4H)
        add(f"b_{l}",
            (params[f"b_ih_{l}"] + params[f"b_hh_{l}"]).reshape(1, -1))
    # FC head (transposed, lane-padded to 4H)
    add("fc_w", params["fc_w"].T)                                    # (H, 26)
    add("fc_b", params["fc_b"].reshape(1, -1))                       # (1, 26)

    slab = jnp.concatenate(blocks, axis=0)                           # (rows, 4H)
    return slab, offsets


# ----------------------------------------------------------------------------
# Kernel
# ----------------------------------------------------------------------------
def make_lstm_fc_kernel(*, n_layers, hidden_dim, input_dim, seq_len, batch,
                        offsets):
    H = hidden_dim
    G = 4 * H
    T = seq_len
    B = batch
    L = n_layers
    Din = input_dim
    f32 = jnp.float32
    bf16 = jnp.bfloat16

    def kernel(x_ref, hc_ref, slab_ref, out_ref):
        def get(name):
            off, r = offsets[name]
            return slab_ref[off:off + r, :]

        # ---- unpack the slab once; cast dot operands to bf16 (hoisted) ----
        w_ih0 = get("w_ih_0").astype(bf16)                 # (Din, G)
        b0 = get("b_0")                                    # (1, G) f32
        w_hh0 = get("w_hh_0").astype(bf16)                 # (H, G)
        w_ih_up, w_hh_up, b_up = [], [], []
        for l in range(1, L):
            w_ih_up.append(get(f"w_ih_{l}").astype(bf16))  # (H, G)
            w_hh_up.append(get(f"w_hh_{l}").astype(bf16))  # (H, G)
            # bias broadcasts hoisted out of the time loop (no per-iter bcast)
            b_up.append(jnp.broadcast_to(get(f"b_{l}"), (B, G)))
        fc_w = get("fc_w").astype(bf16)                    # (H, G), cols>=26 zero
        fc_b = jnp.broadcast_to(get("fc_b"), (B, G))       # (B, G) f32

        # ---- hoisted layer-0 input projection: one MXU matmul, all steps ----
        x_proj = jnp.dot(x_ref[...].astype(bf16), w_ih0,
                         preferred_element_type=f32) + b0  # (T*B, G) f32

        # ---- initial state (f32 throughout the recurrence) ----
        hs = [hc_ref[l] for l in range(L)]                 # each (B, H)
        cs = [hc_ref[L + l] for l in range(L)]

        def cell(gates, c_prev):
            # One EUP sigmoid pass over the full (B, G) block; slice i/f/o.
            # TODO(synk): gate slices live at lane offsets H/2H/3H while c/h sit
            # at lanes 0..H-1; if the bundle dump shows vrot on the critical
            # path, reorder the gate column blocks in prepare_params().
            sig = jax.nn.sigmoid(gates)
            i_g = sig[:, 0:H]
            f_g = sig[:, H:2 * H]
            o_g = sig[:, 3 * H:4 * H]
            g_g = jnp.tanh(gates[:, 2 * H:3 * H])
            c_new = f_g * c_prev + i_g * g_g
            h_new = o_g * jnp.tanh(c_new)
            return h_new, c_new

        # ---- fully unrolled time loop (T static & small) ----
        for t in range(T):
            # layer 0: only the recurrent matmul remains on the critical path
            gates0 = (x_proj[t * B:(t + 1) * B, :]
                      + jnp.dot(hs[0].astype(bf16), w_hh0,
                                preferred_element_type=f32))
            hs[0], cs[0] = cell(gates0, cs[0])
            inp = hs[0]

            # layers 1..L-1: UN-fused — hh term only needs last timestep's h,
            # so the scheduler can issue it before `inp` is ready.
            for li in range(L - 1):
                hh = (jnp.dot(hs[li + 1].astype(bf16), w_hh_up[li],
                              preferred_element_type=f32) + b_up[li])
                gates = jnp.dot(inp.astype(bf16), w_ih_up[li],
                                preferred_element_type=f32) + hh
                hs[li + 1], cs[li + 1] = cell(gates, cs[li + 1])
                inp = hs[li + 1]

        # fc(out[:, -1, :]) == fc(top-layer h at the final timestep)
        out_ref[...] = (jnp.dot(hs[-1].astype(bf16), fc_w,
                                preferred_element_type=f32) + fc_b)

    return kernel


# ----------------------------------------------------------------------------
# Per-call wrapper (jitted). Only x-dependent layout work happens here.
# ----------------------------------------------------------------------------
def net_forward(x, hc0, slab, *, hidden_dim, n_layers, out_dim, offsets):
    """x: (B, input_dim, T) f32; hc0: (2*n_layers, B, H) f32; slab: packed params."""
    B, din, T = x.shape
    H = hidden_dim
    G = 4 * H

    # Single fused layout op: (B, Din, T) -> time-major flattened (T*B, Din).
    x2d = jnp.transpose(x, (2, 0, 1)).reshape(T * B, din).astype(jnp.float32)

    kernel = make_lstm_fc_kernel(n_layers=n_layers, hidden_dim=H,
                                 input_dim=din, seq_len=T, batch=B,
                                 offsets=offsets)

    vmem = pl.BlockSpec(memory_space=pltpu.MemorySpace.VMEM)
    out_padded = pl.pallas_call(
        kernel,
        out_shape=jax.ShapeDtypeStruct((B, G), jnp.float32),
        in_specs=[vmem, vmem, vmem],
        out_specs=vmem,
    )(x2d, hc0, slab)

    return out_padded[:, :out_dim]


# ----------------------------------------------------------------------------
# Pure-JAX f32 reference (faithful to the PyTorch math) for correctness.
# ----------------------------------------------------------------------------
def reference_forward(x, hc0, params, *, hidden_dim, n_layers):
    B, _, T = x.shape
    H = hidden_dim
    xs = jnp.transpose(x, (0, 2, 1))                       # (B, T, Din)
    hs = [hc0[l] for l in range(n_layers)]
    cs = [hc0[n_layers + l] for l in range(n_layers)]
    for t in range(T):
        inp = xs[:, t, :]
        for l in range(n_layers):
            gates = (inp @ params[f"w_ih_{l}"].T
                     + hs[l] @ params[f"w_hh_{l}"].T
                     + params[f"b_ih_{l}"] + params[f"b_hh_{l}"])
            i_g = jax.nn.sigmoid(gates[:, 0:H])
            f_g = jax.nn.sigmoid(gates[:, H:2 * H])
            g_g = jnp.tanh(gates[:, 2 * H:3 * H])
            o_g = jax.nn.sigmoid(gates[:, 3 * H:4 * H])
            cs[l] = f_g * cs[l] + i_g * g_g
            hs[l] = o_g * jnp.tanh(cs[l])
            inp = hs[l]
    return hs[-1] @ params["fc_w"].T + params["fc_b"]


if __name__ == "__main__":
    # Small shapes consistent with the module.
    B, INPUT_DIM, T = 2, 8, 8
    HIDDEN_DIM, N_LAYERS, OUT_DIM = 32, 2, 26

    key = jax.random.PRNGKey(0)
    keys = iter(jax.random.split(key, 64))

    # PyTorch-style uniform(-1/sqrt(H), 1/sqrt(H)) parameter init.
    bound = 1.0 / (HIDDEN_DIM ** 0.5)
    params = {}
    for l in range(N_LAYERS):
        din = INPUT_DIM if l == 0 else HIDDEN_DIM
        params[f"w_ih_{l}"] = jax.random.uniform(
            next(keys), (4 * HIDDEN_DIM, din), jnp.float32, -bound, bound)
        params[f"w_hh_{l}"] = jax.random.uniform(
            next(keys), (4 * HIDDEN_DIM, HIDDEN_DIM), jnp.float32, -bound, bound)
        params[f"b_ih_{l}"] = jax.random.uniform(
            next(keys), (4 * HIDDEN_DIM,), jnp.float32, -bound, bound)
        params[f"b_hh_{l}"] = jax.random.uniform(
            next(keys), (4 * HIDDEN_DIM,), jnp.float32, -bound, bound)
    params["fc_w"] = jax.random.uniform(
        next(keys), (OUT_DIM, HIDDEN_DIM), jnp.float32, -bound, bound)
    params["fc_b"] = jax.random.uniform(
        next(keys), (OUT_DIM,), jnp.float32, -bound, bound)

    # One-time parameter prep (outside the per-call jitted path).
    slab, offsets = prepare_params(params, input_dim=INPUT_DIM,
                                   hidden_dim=HIDDEN_DIM, n_layers=N_LAYERS,
                                   out_dim=OUT_DIM)

    # Input + deterministic stand-in for torch.randn initial states,
    # packed as one (2*L, B, H) array.
    x = jax.random.normal(next(keys), (B, INPUT_DIM, T), jnp.float32)
    hc0 = jax.random.normal(next(keys), (2 * N_LAYERS, B, HIDDEN_DIM),
                            jnp.float32)

    fwd = jax.jit(functools.partial(
        net_forward, hidden_dim=HIDDEN_DIM, n_layers=N_LAYERS,
        out_dim=OUT_DIM, offsets=offsets))

    out = fwd(x, hc0, slab)
    jax.block_until_ready(out)

    ref = reference_forward(x, hc0, params,
                            hidden_dim=HIDDEN_DIM, n_layers=N_LAYERS)
    assert out.shape == (B, OUT_DIM)
    # Tolerance loosened vs the f32 reference because the kernel uses single-
    # pass bf16 MXU operands (state/elementwise math stays f32).
    assert jnp.allclose(out, ref, atol=5e-2, rtol=5e-2), (
        float(jnp.max(jnp.abs(out - ref))))

    print("KERNEL_OK")
</pallas_src>

<mosaic_0001>
module attributes {stable_mosaic.version = 11 : i64} {
  func.func @kernel(%arg0: memref<16x8xf32, #tpu.memory_space<vmem>>, %arg1: memref<4x2x32xf32, #tpu.memory_space<vmem>>, %arg2: memref<160x128xf32, #tpu.memory_space<vmem>>, %arg3: memref<2x128xf32, #tpu.memory_space<vmem>>) attributes {dimension_semantics = [], scalar_prefetch = 0 : i64, scratch_operands = 0 : i64, tpu.core_type = #tpu.core_type<tc>} {
    %c0 = arith.constant 0 : index
    %c0_0 = arith.constant 0 : index
    %0 = vector.load %arg2[%c0, %c0_0] : memref<160x128xf32, #tpu.memory_space<vmem>>, vector<8x128xf32>
    %1 = arith.truncf %0 : vector<8x128xf32> to vector<8x128xbf16>
    %c8 = arith.constant 8 : index
    %c0_1 = arith.constant 0 : index
    %2 = vector.load %arg2[%c8, %c0_1] : memref<160x128xf32, #tpu.memory_space<vmem>>, vector<1x128xf32>
    %c16 = arith.constant 16 : index
    %c0_2 = arith.constant 0 : index
    %3 = vector.load %arg2[%c16, %c0_2] : memref<160x128xf32, #tpu.memory_space<vmem>>, vector<32x128xf32>
    %4 = arith.truncf %3 : vector<32x128xf32> to vector<32x128xbf16>
    %c48 = arith.constant 48 : index
    %c0_3 = arith.constant 0 : index
    %5 = vector.load %arg2[%c48, %c0_3] : memref<160x128xf32, #tpu.memory_space<vmem>>, vector<32x128xf32>
    %6 = arith.truncf %5 : vector<32x128xf32> to vector<32x128xbf16>
    %c80 = arith.constant 80 : index
    %c0_4 = arith.constant 0 : index
    %7 = vector.load %arg2[%c80, %c0_4] : memref<160x128xf32, #tpu.memory_space<vmem>>, vector<32x128xf32>
    %8 = arith.truncf %7 : vector<32x128xf32> to vector<32x128xbf16>
    %c112 = arith.constant 112 : index
    %c0_5 = arith.constant 0 : index
    %9 = vector.load %arg2[%c112, %c0_5] : memref<160x128xf32, #tpu.memory_space<vmem>>, vector<1x128xf32>
    %10 = vector.shape_cast %9 : vector<1x128xf32> to vector<1x128xf32>
    %11 = vector.broadcast %10 : vector<1x128xf32> to vector<2x128xf32>
    %c120 = arith.constant 120 : index
    %c0_6 = arith.constant 0 : index
    %12 = vector.load %arg2[%c120, %c0_6] : memref<160x128xf32, #tpu.memory_space<vmem>>, vector<32x128xf32>
    %13 = arith.truncf %12 : vector<32x128xf32> to vector<32x128xbf16>
    %c152 = arith.constant 152 : index
    %c0_7 = arith.constant 0 : index
    %14 = vector.load %arg2[%c152, %c0_7] : memref<160x128xf32, #tpu.memory_space<vmem>>, vector<1x128xf32>
    %15 = vector.shape_cast %14 : vector<1x128xf32> to vector<1x128xf32>
    %16 = vector.broadcast %15 : vector<1x128xf32> to vector<2x128xf32>
    %c0_8 = arith.constant 0 : index
    %c0_9 = arith.constant 0 : index
    %17 = vector.load %arg0[%c0_8, %c0_9] : memref<16x8xf32, #tpu.memory_space<vmem>>, vector<16x8xf32>
    %18 = arith.truncf %17 : vector<16x8xf32> to vector<16x8xbf16>
    %cst = arith.constant dense<0.000000e+00> : vector<16x128xf32>
    %19 = tpu.matmul %18, %1, %cst {dimension_numbers = #tpu.dot_dimension_numbers<[1], [0], [0], [1], [0, 0, 1, 1], [], []>} : vector<16x8xbf16>, vector<8x128xbf16>, vector<16x128xf32> -> vector<16x128xf32>
    %20 = vector.broadcast %2 : vector<1x128xf32> to vector<16x128xf32>
    %21 = arith.addf %19, %20 : vector<16x128xf32>
    %c0_10 = arith.constant 0 : index
    %c0_11 = arith.constant 0 : index
    %c0_12 = arith.constant 0 : index
    %22 = vector.load %arg1[%c0_10, %c0_11, %c0_12] : memref<4x2x32xf32, #tpu.memory_space<vmem>>, vector<1x2x32xf32>
    %23 = vector.shape_cast %22 : vector<1x2x32xf32> to vector<2x32xf32>
    %c1 = arith.constant 1 : index
    %c0_13 = arith.constant 0 : index
    %c0_14 = arith.constant 0 : index
    %24 = vector.load %arg1[%c1, %c0_13, %c0_14] : memref<4x2x32xf32, #tpu.memory_space<vmem>>, vector<1x2x32xf32>
    %25 = vector.shape_cast %24 : vector<1x2x32xf32> to vector<2x32xf32>
    %c2 = arith.constant 2 : index
    %c0_15 = arith.constant 0 : index
    %c0_16 = arith.constant 0 : index
    %26 = vector.load %arg1[%c2, %c0_15, %c0_16] : memref<4x2x32xf32, #tpu.memory_space<vmem>>, vector<1x2x32xf32>
    %27 = vector.shape_cast %26 : vector<1x2x32xf32> to vector<2x32xf32>
    %c3 = arith.constant 3 : index
    %c0_17 = arith.constant 0 : index
    %c0_18 = arith.constant 0 : index
    %28 = vector.load %arg1[%c3, %c0_17, %c0_18] : memref<4x2x32xf32, #tpu.memory_space<vmem>>, vector<1x2x32xf32>
    %29 = vector.shape_cast %28 : vector<1x2x32xf32> to vector<2x32xf32>
    %30 = vector.extract_strided_slice %21 {offsets = [0, 0], sizes = [2, 128], strides = [1, 1]} : vector<16x128xf32> to vector<2x128xf32>
    %31 = arith.truncf %23 : vector<2x32xf32> to vector<2x32xbf16>
    %cst_19 = arith.constant dense<0.000000e+00> : vector<2x128xf32>
    %32 = tpu.matmul %31, %4, %cst_19 {dimension_numbers = #tpu.dot_dimension_numbers<[1], [0], [0], [1], [0, 0, 1, 1], [], []>} : vector<2x32xbf16>, vector<32x128xbf16>, vector<2x128xf32> -> vector<2x128xf32>
    %33 = arith.addf %30, %32 : vector<2x128xf32>
    %34 = arith.negf %33 : vector<2x128xf32>
    %35 = math.exp %34 : vector<2x128xf32>
    %cst_20 = arith.constant 1.000000e+00 : f32
    %36 = vector.broadcast %cst_20 : f32 to vector<2x128xf32>
    %37 = arith.addf %36, %35 : vector<2x128xf32>
    %38 = arith.divf %36, %37 : vector<2x128xf32>
    %39 = vector.extract_strided_slice %38 {offsets = [0, 0], sizes = [2, 32], strides = [1, 1]} : vector<2x128xf32> to vector<2x32xf32>
    %40 = vector.extract_strided_slice %38 {offsets = [0, 32], sizes = [2, 32], strides = [1, 1]} : vector<2x128xf32> to vector<2x32xf32>
    %41 = vector.extract_strided_slice %38 {offsets = [0, 96], sizes = [2, 32], strides = [1, 1]} : vector<2x128xf32> to vector<2x32xf32>
    %42 = vector.extract_strided_slice %33 {offsets = [0, 64], sizes = [2, 32], strides = [1, 1]} : vector<2x128xf32> to vector<2x32xf32>
    %43 = math.tanh %42 : vector<2x32xf32>
    %44 = arith.mulf %40, %27 : vector<2x32xf32>
    %45 = arith.mulf %39, %43 : vector<2x32xf32>
    %46 = arith.addf %44, %45 : vector<2x32xf32>
    %47 = math.tanh %46 : vector<2x32xf32>
    %48 = arith.mulf %41, %47 : vector<2x32xf32>
    %49 = arith.truncf %25 : vector<2x32xf32> to vector<2x32xbf16>
    %cst_21 = arith.constant dense<0.000000e+00> : vector<2x128xf32>
    %50 = tpu.matmul %49, %8, %cst_21 {dimension_numbers = #tpu.dot_dimension_numbers<[1], [0], [0], [1], [0, 0, 1, 1], [], []>} : vector<2x32xbf16>, vector<32x128xbf16>, vector<2x128xf32> -> vector<2x128xf32>
    %51 = arith.addf %50, %11 : vector<2x128xf32>
    %52 = arith.truncf %48 : vector<2x32xf32> to vector<2x32xbf16>
    %cst_22 = arith.constant dense<0.000000e+00> : vector<2x128xf32>
    %53 = tpu.matmul %52, %6, %cst_22 {dimension_numbers = #tpu.dot_dimension_numbers<[1], [0], [0], [1], [0, 0, 1, 1], [], []>} : vector<2x32xbf16>, vector<32x128xbf16>, vector<2x128xf32> -> vector<2x128xf32>
    %54 = arith.addf %53, %51 : vector<2x128xf32>
    %55 = arith.negf %54 : vector<2x128xf32>
    %56 = math.exp %55 : vector<2x128xf32>
    %cst_23 = arith.constant 1.000000e+00 : f32
    %57 = vector.broadcast %cst_23 : f32 to vector<2x128xf32>
    %58 = arith.addf %57, %56 : vector<2x128xf32>
    %59 = arith.divf %57, %58 : vector<2x128xf32>
    %60 = vector.extract_strided_slice %59 {offsets = [0, 0], sizes = [2, 32], strides = [1, 1]} : vector<2x128xf32> to vector<2x32xf32>
    %61 = vector.extract_strided_slice %59 {offsets = [0, 32], sizes = [2, 32], strides = [1, 1]} : vector<2x128xf32> to vector<2x32xf32>
    %62 = vector.extract_strided_slice %59 {offsets = [0, 96], sizes = [2, 32], strides = [1, 1]} : vector<2x128xf32> to vector<2x32xf32>
    %63 = vector.extract_strided_slice %54 {offsets = [0, 64], sizes = [2, 32], strides = [1, 1]} : vector<2x128xf32> to vector<2x32xf32>
    %64 = math.tanh %63 : vector<2x32xf32>
    %65 = arith.mulf %61, %29 : vector<2x32xf32>
    %66 = arith.mulf %60, %64 : vector<2x32xf32>
    %67 = arith.addf %65, %66 : vector<2x32xf32>
    %68 = math.tanh %67 : vector<2x32xf32>
    %69 = arith.mulf %62, %68 : vector<2x32xf32>
    %70 = vector.extract_strided_slice %21 {offsets = [2, 0], sizes = [2, 128], strides = [1, 1]} : vector<16x128xf32> to vector<2x128xf32>
    %71 = arith.truncf %48 : vector<2x32xf32> to vector<2x32xbf16>
    %cst_24 = arith.constant dense<0.000000e+00> : vector<2x128xf32>
    %72 = tpu.matmul %71, %4, %cst_24 {dimension_numbers = #tpu.dot_dimension_numbers<[1], [0], [0], [1], [0, 0, 1, 1], [], []>} : vector<2x32xbf16>, vector<32x128xbf16>, vector<2x128xf32> -> vector<2x128xf32>
    %73 = arith.addf %70, %72 : vector<2x128xf32>
    %74 = arith.negf %73 : vector<2x128xf32>
    %75 = math.exp %74 : vector<2x128xf32>
    %cst_25 = arith.constant 1.000000e+00 : f32
    %76 = vector.broadcast %cst_25 : f32 to vector<2x128xf32>
    %77 = arith.addf %76, %75 : vector<2x128xf32>
    %78 = arith.divf %76, %77 : vector<2x128xf32>
    %79 = vector.extract_strided_slice %78 {offsets = [0, 0], sizes = [2, 32], strides = [1, 1]} : vector<2x128xf32> to vector<2x32xf32>
    %80 = vector.extract_strided_slice %78 {offsets = [0, 32], sizes = [2, 32], strides = [1, 1]} : vector<2x128xf32> to vector<2x32xf32>
    %81 = vector.extract_strided_slice %78 {offsets = [0, 96], sizes = [2, 32], strides = [1, 1]} : vector<2x128xf32> to vector<2x32xf32>
    %82 = vector.extract_strided_slice %73 {offsets = [0, 64], sizes = [2, 32], strides = [1, 1]} : vector<2x128xf32> to vector<2x32xf32>
    %83 = math.tanh %82 : vector<2x32xf32>
    %84 = arith.mulf %80, %46 : vector<2x32xf32>
    %85 = arith.mulf %79, %83 : vector<2x32xf32>
    %86 = arith.addf %84, %85 : vector<2x32xf32>
    %87 = math.tanh %86 : vector<2x32xf32>
    %88 = arith.mulf %81, %87 : vector<2x32xf32>
    %89 = arith.truncf %69 : vector<2x32xf32> to vector<2x32xbf16>
    %cst_26 = arith.constant dense<0.000000e+00> : vector<2x128xf32>
    %90 = tpu.matmul %89, %8, %cst_26 {dimension_numbers = #tpu.dot_dimension_numbers<[1], [0], [0], [1], [0, 0, 1, 1], [], []>} : vector<2x32xbf16>, vector<32x128xbf16>, vector<2x128xf32> -> vector<2x128xf32>
    %91 = arith.addf %90, %11 : vector<2x128xf32>
    %92 = arith.truncf %88 : vector<2x32xf32> to vector<2x32xbf16>
    %cst_27 = arith.constant dense<0.000000e+00> : vector<2x128xf32>
    %93 = tpu.matmul %92, %6, %cst_27 {dimension_numbers = #tpu.dot_dimension_numbers<[1], [0], [0], [1], [0, 0, 1, 1], [], []>} : vector<2x32xbf16>, vector<32x128xbf16>, vector<2x128xf32> -> vector<2x128xf32>
    %94 = arith.addf %93, %91 : vector<2x128xf32>
    %95 = arith.negf %94 : vector<2x128xf32>
    %96 = math.exp %95 : vector<2x128xf32>
    %cst_28 = arith.constant 1.000000e+00 : f32
    %97 = vector.broadcast %cst_28 : f32 to vector<2x128xf32>
    %98 = arith.addf %97, %96 : vector<2x128xf32>
    %99 = arith.divf %97, %98 : vector<2x128xf32>
    %100 = vector.extract_strided_slice %99 {offsets = [0, 0], sizes = [2, 32], strides = [1, 1]} : vector<2x128xf32> to vector<2x32xf32>
    %101 = vector.extract_strided_slice %99 {offsets = [0, 32], sizes = [2, 32], strides = [1, 1]} : vector<2x128xf32> to vector<2x32xf32>
    %102 = vector.extract_strided_slice %99 {offsets = [0, 96], sizes = [2, 32], strides = [1, 1]} : vector<2x128xf32> to vector<2x32xf32>
    %103 = vector.extract_strided_slice %94 {offsets = [0, 64], sizes = [2, 32], strides = [1, 1]} : vector<2x128xf32> to vector<2x32xf32>
    %104 = math.tanh %103 : vector<2x32xf32>
    %105 = arith.mulf %101, %67 : vector<2x32xf32>
    %106 = arith.mulf %100, %104 : vector<2x32xf32>
    %107 = arith.addf %105, %106 : vector<2x32xf32>
    %108 = math.tanh %107 : vector<2x32xf32>
    %109 = arith.mulf %102, %108 : vector<2x32xf32>
    %110 = vector.extract_strided_slice %21 {offsets = [4, 0], sizes = [2, 128], strides = [1, 1]} : vector<16x128xf32> to vector<2x128xf32>
    %111 = arith.truncf %88 : vector<2x32xf32> to vector<2x32xbf16>
    %cst_29 = arith.constant dense<0.000000e+00> : vector<2x128xf32>
    %112 = tpu.matmul %111, %4, %cst_29 {dimension_numbers = #tpu.dot_dimension_numbers<[1], [0], [0], [1], [0, 0, 1, 1], [], []>} : vector<2x32xbf16>, vector<32x128xbf16>, vector<2x128xf32> -> vector<2x128xf32>
    %113 = arith.addf %110, %112 : vector<2x128xf32>
    %114 = arith.negf %113 : vector<2x128xf32>
    %115 = math.exp %114 : vector<2x128xf32>
    %cst_30 = arith.constant 1.000000e+00 : f32
    %116 = vector.broadcast %cst_30 : f32 to vector<2x128xf32>
    %117 = arith.addf %116, %115 : vector<2x128xf32>
    %118 = arith.divf %116, %117 : vector<2x128xf32>
    %119 = vector.extract_strided_slice %118 {offsets = [0, 0], sizes = [2, 32], strides = [1, 1]} : vector<2x128xf32> to vector<2x32xf32>
    %120 = vector.extract_strided_slice %118 {offsets = [0, 32], sizes = [2, 32], strides = [1, 1]} : vector<2x128xf32> to vector<2x32xf32>
    %121 = vector.extract_strided_slice %118 {offsets = [0, 96], sizes = [2, 32], strides = [1, 1]} : vector<2x128xf32> to vector<2x32xf32>
    %122 = vector.extract_strided_slice %113 {offsets = [0, 64], sizes = [2, 32], strides = [1, 1]} : vector<2x128xf32> to vector<2x32xf32>
    %123 = math.tanh %122 : vector<2x32xf32>
    %124 = arith.mulf %120, %86 : vector<2x32xf32>
    %125 = arith.mulf %119, %123 : vector<2x32xf32>
    %126 = arith.addf %124, %125 : vector<2x32xf32>
    %127 = math.tanh %126 : vector<2x32xf32>
    %128 = arith.mulf %121, %127 : vector<2x32xf32>
    %129 = arith.truncf %109 : vector<2x32xf32> to vector<2x32xbf16>
    %cst_31 = arith.constant dense<0.000000e+00> : vector<2x128xf32>
    %130 = tpu.matmul %129, %8, %cst_31 {dimension_numbers = #tpu.dot_dimension_numbers<[1], [0], [0], [1], [0, 0, 1, 1], [], []>} : vector<2x32xbf16>, vector<32x128xbf16>, vector<2x128xf32> -> vector<2x128xf32>
    %131 = arith.addf %130, %11 : vector<2x128xf32>
    %132 = arith.truncf %128 : vector<2x32xf32> to vector<2x32xbf16>
    %cst_32 = arith.constant dense<0.000000e+00> : vector<2x128xf32>
    %133 = tpu.matmul %132, %6, %cst_32 {dimension_numbers = #tpu.dot_dimension_numbers<[1], [0], [0], [1], [0, 0, 1, 1], [], []>} : vector<2x32xbf16>, vector<32x128xbf16>, vector<2x128xf32> -> vector<2x128xf32>
    %134 = arith.addf %133, %131 : vector<2x128xf32>
    %135 = arith.negf %134 : vector<2x128xf32>
    %136 = math.exp %135 : vector<2x128xf32>
    %cst_33 = arith.constant 1.000000e+00 : f32
    %137 = vector.broadcast %cst_33 : f32 to vector<2x128xf32>
    %138 = arith.addf %137, %136 : vector<2x128xf32>
    %139 = arith.divf %137, %138 : vector<2x128xf32>
    %140 = vector.extract_strided_slice %139 {offsets = [0, 0], sizes = [2, 32], strides = [1, 1]} : vector<2x128xf32> to vector<2x32xf32>
    %141 = vector.extract_strided_slice %139 {offsets = [0, 32], sizes = [2, 32], strides = [1, 1]} : vector<2x128xf32> to vector<2x32xf32>
    %142 = vector.extract_strided_slice %139 {offsets = [0, 96], sizes = [2, 32], strides = [1, 1]} : vector<2x128xf32> to vector<2x32xf32>
    %143 = vector.extract_strided_slice %134 {offsets = [0, 64], sizes = [2, 32], strides = [1, 1]} : vector<2x128xf32> to vector<2x32xf32>
    %144 = math.tanh %143 : vector<2x32xf32>
    %145 = arith.mulf %141, %107 : vector<2x32xf32>
    %146 = arith.mulf %140, %144 : vector<2x32xf32>
    %147 = arith.addf %145, %146 : vector<2x32xf32>
    %148 = math.tanh %147 : vector<2x32xf32>
    %149 = arith.mulf %142, %148 : vector<2x32xf32>
    %150 = vector.extract_strided_slice %21 {offsets = [6, 0], sizes = [2, 128], strides = [1, 1]} : vector<16x128xf32> to vector<2x128xf32>
    %151 = arith.truncf %128 : vector<2x32xf32> to vector<2x32xbf16>
    %cst_34 = arith.constant dense<0.000000e+00> : vector<2x128xf32>
    %152 = tpu.matmul %151, %4, %cst_34 {dimension_numbers = #tpu.dot_dimension_numbers<[1], [0], [0], [1], [0, 0, 1, 1], [], []>} : vector<2x32xbf16>, vector<32x128xbf16>, vector<2x128xf32> -> vector<2x128xf32>
    %153 = arith.addf %150, %152 : vector<2x128xf32>
    %154 = arith.negf %153 : vector<2x128xf32>
    %155 = math.exp %154 : vector<2x128xf32>
    %cst_35 = arith.constant 1.000000e+00 : f32
    %156 = vector.broadcast %cst_35 : f32 to vector<2x128xf32>
    %157 = arith.addf %156, %155 : vector<2x128xf32>
    %158 = arith.divf %156, %157 : vector<2x128xf32>
    %159 = vector.extract_strided_slice %158 {offsets = [0, 0], sizes = [2, 32], strides = [1, 1]} : vector<2x128xf32> to vector<2x32xf32>
    %160 = vector.extract_strided_slice %158 {offsets = [0, 32], sizes = [2, 32], strides = [1, 1]} : vector<2x128xf32> to vector<2x32xf32>
    %161 = vector.extract_strided_slice %158 {offsets = [0, 96], sizes = [2, 32], strides = [1, 1]} : vector<2x128xf32> to vector<2x32xf32>
    %162 = vector.extract_strided_slice %153 {offsets = [0, 64], sizes = [2, 32], strides = [1, 1]} : vector<2x128xf32> to vector<2x32xf32>
    %163 = math.tanh %162 : vector<2x32xf32>
    %164 = arith.mulf %160, %126 : vector<2x32xf32>
    %165 = arith.mulf %159, %163 : vector<2x32xf32>
    %166 = arith.addf %164, %165 : vector<2x32xf32>
    %167 = math.tanh %166 : vector<2x32xf32>
    %168 = arith.mulf %161, %167 : vector<2x32xf32>
    %169 = arith.truncf %149 : vector<2x32xf32> to vector<2x32xbf16>
    %cst_36 = arith.constant dense<0.000000e+00> : vector<2x128xf32>
    %170 = tpu.matmul %169, %8, %cst_36 {dimension_numbers = #tpu.dot_dimension_numbers<[1], [0], [0], [1], [0, 0, 1, 1], [], []>} : vector<2x32xbf16>, vector<32x128xbf16>, vector<2x128xf32> -> vector<2x128xf32>
    %171 = arith.addf %170, %11 : vector<2x128xf32>
    %172 = arith.truncf %168 : vector<2x32xf32> to vector<2x32xbf16>
    %cst_37 = arith.constant dense<0.000000e+00> : vector<2x128xf32>
    %173 = tpu.matmul %172, %6, %cst_37 {dimension_numbers = #tpu.dot_dimension_numbers<[1], [0], [0], [1], [0, 0, 1, 1], [], []>} : vector<2x32xbf16>, vector<32x128xbf16>, vector<2x128xf32> -> vector<2x128xf32>
    %174 = arith.addf %173, %171 : vector<2x128xf32>
    %175 = arith.negf %174 : vector<2x128xf32>
    %176 = math.exp %175 : vector<2x128xf32>
    %cst_38 = arith.constant 1.000000e+00 : f32
    %177 = vector.broadcast %cst_38 : f32 to vector<2x128xf32>
    %178 = arith.addf %177, %176 : vector<2x128xf32>
    %179 = arith.divf %177, %178 : vector<2x128xf32>
    %180 = vector.extract_strided_slice %179 {offsets = [0, 0], sizes = [2, 32], strides = [1, 1]} : vector<2x128xf32> to vector<2x32xf32>
    %181 = vector.extract_strided_slice %179 {offsets = [0, 32], sizes = [2, 32], strides = [1, 1]} : vector<2x128xf32> to vector<2x32xf32>
    %182 = vector.extract_strided_slice %179 {offsets = [0, 96], sizes = [2, 32], strides = [1, 1]} : vector<2x128xf32> to vector<2x32xf32>
    %183 = vector.extract_strided_slice %174 {offsets = [0, 64], sizes = [2, 32], strides = [1, 1]} : vector<2x128xf32> to vector<2x32xf32>
    %184 = math.tanh %183 : vector<2x32xf32>
    %185 = arith.mulf %181, %147 : vector<2x32xf32>
    %186 = arith.mulf %180, %184 : vector<2x32xf32>
    %187 = arith.addf %185, %186 : vector<2x32xf32>
    %188 = math.tanh %187 : vector<2x32xf32>
    %189 = arith.mulf %182, %188 : vector<2x32xf32>
    %190 = vector.extract_strided_slice %21 {offsets = [8, 0], sizes = [2, 128], strides = [1, 1]} : vector<16x128xf32> to vector<2x128xf32>
    %191 = arith.truncf %168 : vector<2x32xf32> to vector<2x32xbf16>
    %cst_39 = arith.constant dense<0.000000e+00> : vector<2x128xf32>
    %192 = tpu.matmul %191, %4, %cst_39 {dimension_numbers = #tpu.dot_dimension_numbers<[1], [0], [0], [1], [0, 0, 1, 1], [], []>} : vector<2x32xbf16>, vector<32x128xbf16>, vector<2x128xf32> -> vector<2x128xf32>
    %193 = arith.addf %190, %192 : vector<2x128xf32>
    %194 = arith.negf %193 : vector<2x128xf32>
    %195 = math.exp %194 : vector<2x128xf32>
    %cst_40 = arith.constant 1.000000e+00 : f32
    %196 = vector.broadcast %cst_40 : f32 to vector<2x128xf32>
    %197 = arith.addf %196, %195 : vector<2x128xf32>
    %198 = arith.divf %196, %197 : vector<2x128xf32>
    %199 = vector.extract_strided_slice %198 {offsets = [0, 0], sizes = [2, 32], strides = [1, 1]} : vector<2x128xf32> to vector<2x32xf32>
    %200 = vector.extract_strided_slice %198 {offsets = [0, 32], sizes = [2, 32], strides = [1, 1]} : vector<2x128xf32> to vector<2x32xf32>
    %201 = vector.extract_strided_slice %198 {offsets = [0, 96], sizes = [2, 32], strides = [1, 1]} : vector<2x128xf32> to vector<2x32xf32>
    %202 = vector.extract_strided_slice %193 {offsets = [0, 64], sizes = [2, 32], strides = [1, 1]} : vector<2x128xf32> to vector<2x32xf32>
    %203 = math.tanh %202 : vector<2x32xf32>
    %204 = arith.mulf %200, %166 : vector<2x32xf32>
    %205 = arith.mulf %199, %203 : vector<2x32xf32>
    %206 = arith.addf %204, %205 : vector<2x32xf32>
    %207 = math.tanh %206 : vector<2x32xf32>
    %208 = arith.mulf %201, %207 : vector<2x32xf32>
    %209 = arith.truncf %189 : vector<2x32xf32> to vector<2x32xbf16>
    %cst_41 = arith.constant dense<0.000000e+00> : vector<2x128xf32>
    %210 = tpu.matmul %209, %8, %cst_41 {dimension_numbers = #tpu.dot_dimension_numbers<[1], [0], [0], [1], [0, 0, 1, 1], [], []>} : vector<2x32xbf16>, vector<32x128xbf16>, vector<2x128xf32> -> vector<2x128xf32>
    %211 = arith.addf %210, %11 : vector<2x128xf32>
    %212 = arith.truncf %208 : vector<2x32xf32> to vector<2x32xbf16>
    %cst_42 = arith.constant dense<0.000000e+00> : vector<2x128xf32>
    %213 = tpu.matmul %212, %6, %cst_42 {dimension_numbers = #tpu.dot_dimension_numbers<[1], [0], [0], [1], [0, 0, 1, 1], [], []>} : vector<2x32xbf16>, vector<32x128xbf16>, vector<2x128xf32> -> vector<2x128xf32>
    %214 = arith.addf %213, %211 : vector<2x128xf32>
    %215 = arith.negf %214 : vector<2x128xf32>
    %216 = math.exp %215 : vector<2x128xf32>
    %cst_43 = arith.constant 1.000000e+00 : f32
    %217 = vector.broadcast %cst_43 : f32 to vector<2x128xf32>
    %218 = arith.addf %217, %216 : vector<2x128xf32>
    %219 = arith.divf %217, %218 : vector<2x128xf32>
    %220 = vector.extract_strided_slice %219 {offsets = [0, 0], sizes = [2, 32], strides = [1, 1]} : vector<2x128xf32> to vector<2x32xf32>
    %221 = vector.extract_strided_slice %219 {offsets = [0, 32], sizes = [2, 32], strides = [1, 1]} : vector<2x128xf32> to vector<2x32xf32>
    %222 = vector.extract_strided_slice %219 {offsets = [0, 96], sizes = [2, 32], strides = [1, 1]} : vector<2x128xf32> to vector<2x32xf32>
    %223 = vector.extract_strided_slice %214 {offsets = [0, 64], sizes = [2, 32], strides = [1, 1]} : vector<2x128xf32> to vector<2x32xf32>
    %224 = math.tanh %223 : vector<2x32xf32>
    %225 = arith.mulf %221, %187 : vector<2x32xf32>
    %226 = arith.mulf %220, %224 : vector<2x32xf32>
    %227 = arith.addf %225, %226 : vector<2x32xf32>
    %228 = math.tanh %227 : vector<2x32xf32>
    %229 = arith.mulf %222, %228 : vector<2x32xf32>
    %230 = vector.extract_strided_slice %21 {offsets = [10, 0], sizes = [2, 128], strides = [1, 1]} : vector<16x128xf32> to vector<2x128xf32>
    %231 = arith.truncf %208 : vector<2x32xf32> to vector<2x32xbf16>
    %cst_44 = arith.constant dense<0.000000e+00> : vector<2x128xf32>
    %232 = tpu.matmul %231, %4, %cst_44 {dimension_numbers = #tpu.dot_dimension_numbers<[1], [0], [0], [1], [0, 0, 1, 1], [], []>} : vector<2x32xbf16>, vector<32x128xbf16>, vector<2x128xf32> -> vector<2x128xf32>
    %233 = arith.addf %230, %232 : vector<2x128xf32>
    %234 = arith.negf %233 : vector<2x128xf32>
    %235 = math.exp %234 : vector<2x128xf32>
    %cst_45 = arith.constant 1.000000e+00 : f32
    %236 = vector.broadcast %cst_45 : f32 to vector<2x128xf32>
    %237 = arith.addf %236, %235 : vector<2x128xf32>
    %238 = arith.divf %236, %237 : vector<2x128xf32>
    %239 = vector.extract_strided_slice %238 {offsets = [0, 0], sizes = [2, 32], strides = [1, 1]} : vector<2x128xf32> to vector<2x32xf32>
    %240 = vector.extract_strided_slice %238 {offsets = [0, 32], sizes = [2, 32], strides = [1, 1]} : vector<2x128xf32> to vector<2x32xf32>
    %241 = vector.extract_strided_slice %238 {offsets = [0, 96], sizes = [2, 32], strides = [1, 1]} : vector<2x128xf32> to vector<2x32xf32>
    %242 = vector.extract_strided_slice %233 {offsets = [0, 64], sizes = [2, 32], strides = [1, 1]} : vector<2x128xf32> to vector<2x32xf32>
    %243 = math.tanh %242 : vector<2x32xf32>
    %244 = arith.mulf %240, %206 : vector<2x32xf32>
    %245 = arith.mulf %239, %243 : vector<2x32xf32>
    %246 = arith.addf %244, %245 : vector<2x32xf32>
    %247 = math.tanh %246 : vector<2x32xf32>
    %248 = arith.mulf %241, %247 : vector<2x32xf32>
    %249 = arith.truncf %229 : vector<2x32xf32> to vector<2x32xbf16>
    %cst_46 = arith.constant dense<0.000000e+00> : vector<2x128xf32>
    %250 = tpu.matmul %249, %8, %cst_46 {dimension_numbers = #tpu.dot_dimension_numbers<[1], [0], [0], [1], [0, 0, 1, 1], [], []>} : vector<2x32xbf16>, vector<32x128xbf16>, vector<2x128xf32> -> vector<2x128xf32>
    %251 = arith.addf %250, %11 : vector<2x128xf32>
    %252 = arith.truncf %248 : vector<2x32xf32> to vector<2x32xbf16>
    %cst_47 = arith.constant dense<0.000000e+00> : vector<2x128xf32>
    %253 = tpu.matmul %252, %6, %cst_47 {dimension_numbers = #tpu.dot_dimension_numbers<[1], [0], [0], [1], [0, 0, 1, 1], [], []>} : vector<2x32xbf16>, vector<32x128xbf16>, vector<2x128xf32> -> vector<2x128xf32>
    %254 = arith.addf %253, %251 : vector<2x128xf32>
    %255 = arith.negf %254 : vector<2x128xf32>
    %256 = math.exp %255 : vector<2x128xf32>
    %cst_48 = arith.constant 1.000000e+00 : f32
    %257 = vector.broadcast %cst_48 : f32 to vector<2x128xf32>
    %258 = arith.addf %257, %256 : vector<2x128xf32>
    %259 = arith.divf %257, %258 : vector<2x128xf32>
    %260 = vector.extract_strided_slice %259 {offsets = [0, 0], sizes = [2, 32], strides = [1, 1]} : vector<2x128xf32> to vector<2x32xf32>
    %261 = vector.extract_strided_slice %259 {offsets = [0, 32], sizes = [2, 32], strides = [1, 1]} : vector<2x128xf32> to vector<2x32xf32>
    %262 = vector.extract_strided_slice %259 {offsets = [0, 96], sizes = [2, 32], strides = [1, 1]} : vector<2x128xf32> to vector<2x32xf32>
    %263 = vector.extract_strided_slice %254 {offsets = [0, 64], sizes = [2, 32], strides = [1, 1]} : vector<2x128xf32> to vector<2x32xf32>
    %264 = math.tanh %263 : vector<2x32xf32>
    %265 = arith.mulf %261, %227 : vector<2x32xf32>
    %266 = arith.mulf %260, %264 : vector<2x32xf32>
    %267 = arith.addf %265, %266 : vector<2x32xf32>
    %268 = math.tanh %267 : vector<2x32xf32>
    %269 = arith.mulf %262, %268 : vector<2x32xf32>
    %270 = vector.extract_strided_slice %21 {offsets = [12, 0], sizes = [2, 128], strides = [1, 1]} : vector<16x128xf32> to vector<2x128xf32>
    %271 = arith.truncf %248 : vector<2x32xf32> to vector<2x32xbf16>
    %cst_49 = arith.constant dense<0.000000e+00> : vector<2x128xf32>
    %272 = tpu.matmul %271, %4, %cst_49 {dimension_numbers = #tpu.dot_dimension_numbers<[1], [0], [0], [1], [0, 0, 1, 1], [], []>} : vector<2x32xbf16>, vector<32x128xbf16>, vector<2x128xf32> -> vector<2x128xf32>
    %273 = arith.addf %270, %272 : vector<2x128xf32>
    %274 = arith.negf %273 : vector<2x128xf32>
    %275 = math.exp %274 : vector<2x128xf32>
    %cst_50 = arith.constant 1.000000e+00 : f32
    %276 = vector.broadcast %cst_50 : f32 to vector<2x128xf32>
    %277 = arith.addf %276, %275 : vector<2x128xf32>
    %278 = arith.divf %276, %277 : vector<2x128xf32>
    %279 = vector.extract_strided_slice %278 {offsets = [0, 0], sizes = [2, 32], strides = [1, 1]} : vector<2x128xf32> to vector<2x32xf32>
    %280 = vector.extract_strided_slice %278 {offsets = [0, 32], sizes = [2, 32], strides = [1, 1]} : vector<2x128xf32> to vector<2x32xf32>
    %281 = vector.extract_strided_slice %278 {offsets = [0, 96], sizes = [2, 32], strides = [1, 1]} : vector<2x128xf32> to vector<2x32xf32>
    %282 = vector.extract_strided_slice %273 {offsets = [0, 64], sizes = [2, 32], strides = [1, 1]} : vector<2x128xf32> to vector<2x32xf32>
    %283 = math.tanh %282 : vector<2x32xf32>
    %284 = arith.mulf %280, %246 : vector<2x32xf32>
    %285 = arith.mulf %279, %283 : vector<2x32xf32>
    %286 = arith.addf %284, %285 : vector<2x32xf32>
    %287 = math.tanh %286 : vector<2x32xf32>
    %288 = arith.mulf %281, %287 : vector<2x32xf32>
    %289 = arith.truncf %269 : vector<2x32xf32> to vector<2x32xbf16>
    %cst_51 = arith.constant dense<0.000000e+00> : vector<2x128xf32>
    %290 = tpu.matmul %289, %8, %cst_51 {dimension_numbers = #tpu.dot_dimension_numbers<[1], [0], [0], [1], [0, 0, 1, 1], [], []>} : vector<2x32xbf16>, vector<32x128xbf16>, vector<2x128xf32> -> vector<2x128xf32>
    %291 = arith.addf %290, %11 : vector<2x128xf32>
    %292 = arith.truncf %288 : vector<2x32xf32> to vector<2x32xbf16>
    %cst_52 = arith.constant dense<0.000000e+00> : vector<2x128xf32>
    %293 = tpu.matmul %292, %6, %cst_52 {dimension_numbers = #tpu.dot_dimension_numbers<[1], [0], [0], [1], [0, 0, 1, 1], [], []>} : vector<2x32xbf16>, vector<32x128xbf16>, vector<2x128xf32> -> vector<2x128xf32>
    %294 = arith.addf %293, %291 : vector<2x128xf32>
    %295 = arith.negf %294 : vector<2x128xf32>
    %296 = math.exp %295 : vector<2x128xf32>
    %cst_53 = arith.constant 1.000000e+00 : f32
    %297 = vector.broadcast %cst_53 : f32 to vector<2x128xf32>
    %298 = arith.addf %297, %296 : vector<2x128xf32>
    %299 = arith.divf %297, %298 : vector<2x128xf32>
    %300 = vector.extract_strided_slice %299 {offsets = [0, 0], sizes = [2, 32], strides = [1, 1]} : vector<2x128xf32> to vector<2x32xf32>
    %301 = vector.extract_strided_slice %299 {offsets = [0, 32], sizes = [2, 32], strides = [1, 1]} : vector<2x128xf32> to vector<2x32xf32>
    %302 = vector.extract_strided_slice %299 {offsets = [0, 96], sizes = [2, 32], strides = [1, 1]} : vector<2x128xf32> to vector<2x32xf32>
    %303 = vector.extract_strided_slice %294 {offsets = [0, 64], sizes = [2, 32], strides = [1, 1]} : vector<2x128xf32> to vector<2x32xf32>
    %304 = math.tanh %303 : vector<2x32xf32>
    %305 = arith.mulf %301, %267 : vector<2x32xf32>
    %306 = arith.mulf %300, %304 : vector<2x32xf32>
    %307 = arith.addf %305, %306 : vector<2x32xf32>
    %308 = math.tanh %307 : vector<2x32xf32>
    %309 = arith.mulf %302, %308 : vector<2x32xf32>
    %310 = vector.extract_strided_slice %21 {offsets = [14, 0], sizes = [2, 128], strides = [1, 1]} : vector<16x128xf32> to vector<2x128xf32>
    %311 = arith.truncf %288 : vector<2x32xf32> to vector<2x32xbf16>
    %cst_54 = arith.constant dense<0.000000e+00> : vector<2x128xf32>
    %312 = tpu.matmul %311, %4, %cst_54 {dimension_numbers = #tpu.dot_dimension_numbers<[1], [0], [0], [1], [0, 0, 1, 1], [], []>} : vector<2x32xbf16>, vector<32x128xbf16>, vector<2x128xf32> -> vector<2x128xf32>
    %313 = arith.addf %310, %312 : vector<2x128xf32>
    %314 = arith.negf %313 : vector<2x128xf32>
    %315 = math.exp %314 : vector<2x128xf32>
    %cst_55 = arith.constant 1.000000e+00 : f32
    %316 = vector.broadcast %cst_55 : f32 to vector<2x128xf32>
    %317 = arith.addf %316, %315 : vector<2x128xf32>
    %318 = arith.divf %316, %317 : vector<2x128xf32>
    %319 = vector.extract_strided_slice %318 {offsets = [0, 0], sizes = [2, 32], strides = [1, 1]} : vector<2x128xf32> to vector<2x32xf32>
    %320 = vector.extract_strided_slice %318 {offsets = [0, 32], sizes = [2, 32], strides = [1, 1]} : vector<2x128xf32> to vector<2x32xf32>
    %321 = vector.extract_strided_slice %318 {offsets = [0, 96], sizes = [2, 32], strides = [1, 1]} : vector<2x128xf32> to vector<2x32xf32>
    %322 = vector.extract_strided_slice %313 {offsets = [0, 64], sizes = [2, 32], strides = [1, 1]} : vector<2x128xf32> to vector<2x32xf32>
    %323 = math.tanh %322 : vector<2x32xf32>
    %324 = arith.mulf %320, %286 : vector<2x32xf32>
    %325 = arith.mulf %319, %323 : vector<2x32xf32>
    %326 = arith.addf %324, %325 : vector<2x32xf32>
    %327 = math.tanh %326 : vector<2x32xf32>
    %328 = arith.mulf %321, %327 : vector<2x32xf32>
    %329 = arith.truncf %309 : vector<2x32xf32> to vector<2x32xbf16>
    %cst_56 = arith.constant dense<0.000000e+00> : vector<2x128xf32>
    %330 = tpu.matmul %329, %8, %cst_56 {dimension_numbers = #tpu.dot_dimension_numbers<[1], [0], [0], [1], [0, 0, 1, 1], [], []>} : vector<2x32xbf16>, vector<32x128xbf16>, vector<2x128xf32> -> vector<2x128xf32>
    %331 = arith.addf %330, %11 : vector<2x128xf32>
    %332 = arith.truncf %328 : vector<2x32xf32> to vector<2x32xbf16>
    %cst_57 = arith.constant dense<0.000000e+00> : vector<2x128xf32>
    %333 = tpu.matmul %332, %6, %cst_57 {dimension_numbers = #tpu.dot_dimension_numbers<[1], [0], [0], [1], [0, 0, 1, 1], [], []>} : vector<2x32xbf16>, vector<32x128xbf16>, vector<2x128xf32> -> vector<2x128xf32>
    %334 = arith.addf %333, %331 : vector<2x128xf32>
    %335 = arith.negf %334 : vector<2x128xf32>
    %336 = math.exp %335 : vector<2x128xf32>
    %cst_58 = arith.constant 1.000000e+00 : f32
    %337 = vector.broadcast %cst_58 : f32 to vector<2x128xf32>
    %338 = arith.addf %337, %336 : vector<2x128xf32>
    %339 = arith.divf %337, %338 : vector<2x128xf32>
    %340 = vector.extract_strided_slice %339 {offsets = [0, 0], sizes = [2, 32], strides = [1, 1]} : vector<2x128xf32> to vector<2x32xf32>
    %341 = vector.extract_strided_slice %339 {offsets = [0, 32], sizes = [2, 32], strides = [1, 1]} : vector<2x128xf32> to vector<2x32xf32>
    %342 = vector.extract_strided_slice %339 {offsets = [0, 96], sizes = [2, 32], strides = [1, 1]} : vector<2x128xf32> to vector<2x32xf32>
    %343 = vector.extract_strided_slice %334 {offsets = [0, 64], sizes = [2, 32], strides = [1, 1]} : vector<2x128xf32> to vector<2x32xf32>
    %344 = math.tanh %343 : vector<2x32xf32>
    %345 = arith.mulf %341, %307 : vector<2x32xf32>
    %346 = arith.mulf %340, %344 : vector<2x32xf32>
    %347 = arith.addf %345, %346 : vector<2x32xf32>
    %348 = math.tanh %347 : vector<2x32xf32>
    %349 = arith.mulf %342, %348 : vector<2x32xf32>
    %350 = arith.truncf %349 : vector<2x32xf32> to vector<2x32xbf16>
    %cst_59 = arith.constant dense<0.000000e+00> : vector<2x128xf32>
    %351 = tpu.matmul %350, %13, %cst_59 {dimension_numbers = #tpu.dot_dimension_numbers<[1], [0], [0], [1], [0, 0, 1, 1], [], []>} : vector<2x32xbf16>, vector<32x128xbf16>, vector<2x128xf32> -> vector<2x128xf32>
    %352 = arith.addf %351, %16 : vector<2x128xf32>
    %c0_60 = arith.constant 0 : index
    %c0_61 = arith.constant 0 : index
    %353 = vector.load %arg3[%c0_60, %c0_61] : memref<2x128xf32, #tpu.memory_space<vmem>>, vector<2x128xf32>
    tpu.vector_store %arg3[%c0_60, %c0_61], %352 {strides = array<i32>} : memref<2x128xf32, #tpu.memory_space<vmem>>, vector<2x128xf32>,
    return
  }
}

</mosaic_0001>

<bundles_post_ra>
// kernel: net_forward.1
= control target key start
LH: loop header
LB: loop body
LE: loop exit
PB: predicated region body
PF: predicated region fallthrough
CT: control target
= control target key end

     0   :  { %8 = vsyncpa [#allocation3], 0  ;;  %s2665_s0 = inlined_call_operand.vmem [shape: f32[16,8], index: 0, kind: input, shape index: {}]   ;;  %s2666_s1 = inlined_call_operand.vmem [shape: f32[4,2,32], index: 1, kind: input, shape index: {}]   ;;  %s2667_s2 = inlined_call_operand.hbm [shape: f32[160,128], index: 2, kind: input, shape index: {}]   ;;  %s2668_s3 = inlined_call_operand.hbm [shape: f32[2,128], index: 3, kind: output, shape index: {}]  }
   0x1   :  { %9 = vsyncpa [#allocation4], 0  ;;  %s2268_s12 = smov [#allocation2]   ;;  %s2220_s16 = scalar_lea.hbm %s2667_s2, 2560 }
   0x2   :  { %s19_s13 = sshll.u32 %s2268_s12, 4  ;;  %p2221_p0 = scmp.ne.s32.totalorder %s2667_s2, %s2220_s16  ;;  %s20_s13 = int_to_ptr.vmem [resolvable:$true] %s19_s13 }
   0x3   :  { %p2224_p1 = scmp.lt.u32.totalorder %s2220_s16, %s2667_s2 }
   0x5   :  { %p2226_p2 = pnand %p2224_p1, %p2221_p0 }
   0x7   :  { %2229 = shalt.err (!%p2226_p2)
}
   0x8   :  { %s2230_s21 = scalar_lea.vmem %s20_s13, 2560  ;;  %p2235_p4 = scmp.lt.s32.totalorder %s20_s13, %s20_s13 }
   0x9   :  { %p2231_p3 = scmp.ne.s32.totalorder %s20_s13, %s2230_s21  ;;  %p2236_p5 = scmp.lt.s32.totalorder %s2230_s21, %s2230_s21 }
   0xb   :  { %p2237_p6 = por %p2236_p5, %p2235_p4 }
   0xd   :  { %p2238_p7 = pnand %p2237_p6, %p2231_p3 }
   0xf   :  { %2241 = shalt.err (!%p2238_p7)
}
  0x10   :  { %s2269_s22 = smov 128   ;;  %s2270_s23 = smov 8  }
  0x11   :  { %25 = dma.hbm_to_vmem [thread:$0]  %s2667_s2, 2560, %s20_s13, [#allocation3], %s2269_s22, %s2269_s22, %s2270_s23  }
  0x12   :  { %2264 = dma.done.wait [#allocation3], 2560  }
  0x13   :  { %2265 = vsyncadd [#allocation3], 4294964736  ;;  %v2271_v0 = vmov 0.0   ;;  %vm2272_vm0 = vmmov 0   ;;  %v33_v1 = vld [vmem:[#allocation2 + $0x10] sm:$0xff]  ;;  %v34_v2 = vld [vmem:[#allocation2 + $0x18] sm:$0xff] }
  0x14   :  { %1843 = vmatprep.subr.bf16.mxu1 %v2271_v0  ;;  %1837 = vmatprep.subr.bf16.mxu0 %v2271_v0  ;;  %v30_v3 = vld [vmem:[#allocation2] sm:$0xff]  ;;  %vm78_vm1 = vcmask 1043456   ;;  %v2314_v4 = vpack.c.bf16 %v34_v2, %v33_v1  ;;  %v68_v7 = vld [vmem:[%s2665_s0 + $0x8] sm:$0xff]  ;;  %vm74_vm2 = vcmask 64512   ;;  %vm131_vm3 = vcmask 261120   ;;  %s2274_s6 = smov 32  }
  0x15   :  { %1839 = vmatprep.mubr.msk.bf16.mxu0 %vm2272_vm0, %v2271_v0  ;;  %1847 = vmatprep.mubr.msk.bf16.mxu1 %vm2272_vm0, %v2271_v0  ;;  %v31_v5 = vpack.c.bf16 %v30_v3, %v30_v3  ;;  %v67_v6 = vld [vmem:[%s2665_s0] sm:$0xff]  ;;  %v36_v9 = vld [vmem:[#allocation2 + $0x28] sm:$0xff]  ;;  %s2273_s0 = smov 64   ;;  %v45_v39 = vld [vmem:[#allocation2 + $0x50] sm:$0xff] }
  0x16   :  { %v35_v8 = vld [vmem:[#allocation2 + $0x20] sm:$0xff]  ;;  %1844 = vmatpush3.bf16.msra.mxu1 %v2314_v4  ;;  %v69_v11 = vpack.c.bf16 %v68_v7, %v67_v6  ;;  %v1714_v15 = vld [vmem:[#allocation2 + $0x8] ss:$0 sm:$0xff]  ;;  %v46_v40 = vld [vmem:[#allocation2 + $0x58] sm:$0xff] }
  0x17   :  { %v80_v10 = vsel %vm78_vm1, %v31_v5, 0  ;;  %v2323_v12 = vpack.c.bf16 %v36_v9, %v35_v8  ;;  %v123_v13 = vld [vmem:[%s2666_s1] sm:$0x3]  ;;  %1845 = vmatprep.subr.bf16.mxu1 %v2271_v0  ;;  %v1717_v28 = vld [vmem:[%s2666_s1 + $0x4] sm:$0x3]  ;;  %v2355_v42 = vpack.c.bf16 %v46_v40, %v45_v39  ;;  %v48_v43 = vld [vmem:[#allocation2 + $0x68] sm:$0xff] }
  0x18   :  { %1838 = vmatpush3.bf16.msra.mxu0 %v80_v10  ;;  %v130_v14 = vpack.c.bf16 %v123_v13, %v123_v13  ;;  %v47_v41 = vld [vmem:[#allocation2 + $0x60] sm:$0xff]  ;;  %v39_v46 = vld [vmem:[#allocation2 + $0x30] sm:$0xff]  ;;  %v40_v47 = vld [vmem:[#allocation2 + $0x38] sm:$0xff] }
  0x19   :  { %1851 = vmatprep.subr.bf16.mxu0 %v2271_v0  ;;  %v2358_v44 = vpack.c.bf16 %v48_v43, %v47_v41  ;;  %v1716_v45 = vld [vmem:[%s2666_s1 + $0x2] sm:$0x3]  ;;  %v2365_v49 = vpack.c.bf16 %v40_v47, %v39_v46  ;;  %v42_v52 = vld [vmem:[#allocation2 + $0x48] sm:$0xff]  ;;  %v2393_v58 = vld [vmem:[#allocation2 + $0x70] ss:$0 sm:$0xff] }
  0x1a   :  { %1846 = vmatpush3.bf16.msra.mxu1 %v2323_v12  ;;  %v204_v48 = vpack.c.bf16 %v1716_v45, %v1716_v45  ;;  %v41_v51 = vld [vmem:[#allocation2 + $0x40] sm:$0xff] }
  0x1b   :  { %1840 = vmatmul.mubr.msk.bf16.vlgmr.msra.gmra.mrb[0].mxu0 %vm74_vm2, %v69_v11  ;;  %1867 = vmatprep.subr.bf16.mxu1 %v2271_v0  ;;  %v2371_v53 = vpack.c.bf16 %v42_v52, %v41_v51  ;;  %v1718_v9 = vld [vmem:[%s2666_s1 + $0x6] sm:$0x3]  ;;  %s2275_s1 = smov [#allocation5]  }
  0x1c   :  { %1855 = vmatprep.mubr.msk.bf16.mxu0 %vm2272_vm0, %v2271_v0  ;;  %1852 = vmatpush3.bf16.msra.mxu0 %v2355_v42  ;;  %s1703_s11 = sshll.u32 %s2275_s1, 4  ;;  %s1704_s11 = int_to_ptr.vmem [resolvable:$true] %s1703_s11 }
  0x1d   :  { %1848 = vmatmul.mubr.msk.bf16.vlgmr.msra.gmra.mrb[0].mxu1 %vm131_vm3, %v130_v14  ;;  %1853 = vmatprep.subr.bf16.mxu0 %v2271_v0  ;;  %s2242_s12 = scalar_lea.vmem %s1704_s11, 32  ;;  %p2247_p9 = scmp.lt.s32.totalorder %s1704_s11, %s1704_s11 }
  0x1e   :  { %1868 = vmatpush3.bf16.msra.mxu1 %v2314_v4  ;;  %1871 = vmatprep.mubr.msk.bf16.mxu1 %vm2272_vm0, %v2271_v0  ;;  %p2243_p8 = scmp.ne.s32.totalorder %s1704_s11, %s2242_s12  ;;  %p2248_p10 = scmp.lt.s32.totalorder %s2242_s12, %s2242_s12 }
  0x1f   :  { %1869 = vmatprep.subr.bf16.mxu1 %v2271_v0 }
  0x20   :  { %1854 = vmatpush3.bf16.msra.mxu0 %v2358_v44  ;;  %p2249_p11 = por %p2248_p10, %p2247_p9 }
  0x21   :  { %1859 = vmatprep.subr.bf16.mxu0 %v2271_v0 }
  0x22   :  { %1870 = vmatpush3.bf16.msra.mxu1 %v2323_v12  ;;  %p2250_p12 = pnand %p2249_p11, %p2243_p8 }
  0x23   :  { %1875 = vmatprep.subr.bf16.mxu1 %v2271_v0  ;;  %1856 = vmatmul.mubr.msk.bf16.vlgmr.msra.gmra.mrb[4].mxu0 %vm131_vm3, %v204_v48 }
  0x24   :  { %1860 = vmatpush3.bf16.msra.mxu0 %v2365_v49  ;;  %1863 = vmatprep.mubr.msk.bf16.mxu0 %vm2272_vm0, %v2271_v0 }
  0x25   :  { %1861 = vmatprep.subr.bf16.mxu0 %v2271_v0 }
  0x28   :  { %1862 = vmatpush3.bf16.msra.mxu0 %v2371_v53 }
  0x29   :  { %1891 = vmatprep.subr.bf16.mxu0 %v2271_v0 }
  0xee   :  { %v116_v16 = vpop.f32.mrb[0].mxu0 }
  0xef   :  { %v2341_v17 = vadd.f32 %v1714_v15, %v116_v16  ;;  %v1841_v18 = vpop.f32.mrb[1].mxu0 }
  0xf0   :  { %v119_v19 = vpop.f32.mrb[2].mxu0  ;;  %v169_v22 = vpop.f32.mrb[0].mxu1 }
  0xf1   :  { %v2343_v20 = vadd.f32 %v1714_v15, %v119_v19  ;;  %v1842_v21 = vpop.f32.mrb[3].mxu0  ;;  %v175_v23 = vadd.f32 %v169_v22, %v2341_v17  ;;  %v1849_v24 = vpop.f32.mrb[1].mxu1 }
  0xf2   :  { %v172_v25 = vpop.f32.mrb[2].mxu1 }
  0xf3   :  { %2091 = vtanh.f32 %v175_v23  ;;  %v1850_v26 = vpop.f32.mrb[3].mxu1  ;;  %v1720_v29 = vmul.f32 -1.442695, %v175_v23 }
  0xf5   :  { %2093 = vpow2.f32 %v1720_v29 }
  0xfd   :  { %v2092_v27 = vpop.eup %2091 }
  0xfe   :  { %189 = vrot.lane.b32.xlu0 %v2092_v27, %s2273_s0 }
  0xff   :  { %v2094_v30 = vpop.eup %2093 }
 0x100   :  { %v179_v31 = vadd.f32 1.0, %v2094_v30 }
 0x102   :  { %184 = vrot.lane.b32.xlu0 %v1717_v28, %s2274_s6  ;;  %2095 = vrcp.f32 %v179_v31 }
 0x10c   :  { %v2096_v32 = vpop.eup %2095 }
 0x170   :  { %v190_v33 = vpop.permute.xlu0 %189 }
 0x171   :  { %v192_v34 = vmul.f32 %v2096_v32, %v190_v33 }
 0x173   :  { %194 = vrot.lane.b32.xlu1 %v192_v34, %s2274_s6 }
 0x174   :  { %v185_v35 = vpop.permute.xlu0 %184 }
 0x175   :  { %v187_v36 = vmul.f32 %v2096_v32, %v185_v35 }
 0x1e5   :  { %v195_v37 = vpop.permute.xlu1 %194 }
 0x1e6   :  { %v2352_v38 = vadd.f32 %v195_v37, %v187_v36 }
 0x1e8   :  { %2097 = vtanh.f32 %v2352_v38  ;;  %v375_v28 = vrot.slane %v2352_v38, 6 }
 0x1f2   :  { %v2098_v50 = vpop.eup %2097 }
 0x1f3   :  { %200 = vrot.lane.b32.xlu1 %v2098_v50, %s2273_s0 }
 0x265   :  { %v201_v54 = vpop.permute.xlu1 %200 }
 0x266   :  { %v203_v55 = vmul.f32 %v2096_v32, %v201_v54 }
 0x268   :  { %v248_v56 = vpack.c.bf16 %v203_v55, %v203_v55 }
 0x26a   :  { %250 = vrot.lane.b32.xlu0 %v248_v56, %s2274_s6 }
 0x2dc   :  { %v251_v57 = vpop.permute.xlu0 %250 }
 0x2dd   :  { %1864 = vmatmul.mubr.msk.bf16.vlgmr.msra.gmra.mrb[4].mxu0 %vm131_vm3, %v251_v57  ;;  %1872 = vmatmul.mubr.msk.bf16.vlgmr.msra.gmra.mrb[4].mxu1 %vm131_vm3, %v251_v57 }
 0x2de   :  { %1876 = vmatpush3.bf16.msra.mxu1 %v2355_v42  ;;  %1892 = vmatpush3.bf16.msra.mxu0 %v2314_v4 }
 0x2df   :  { %1877 = vmatprep.subr.bf16.mxu1 %v2271_v0  ;;  %1879 = vmatprep.mubr.msk.bf16.mxu1 %vm2272_vm0, %v2271_v0 }
 0x2e0   :  { %1893 = vmatprep.subr.bf16.mxu0 %v2271_v0  ;;  %1895 = vmatprep.mubr.msk.bf16.mxu0 %vm2272_vm0, %v2271_v0 }
 0x2e2   :  { %1878 = vmatpush3.bf16.msra.mxu1 %v2358_v44  ;;  %1894 = vmatpush3.bf16.msra.mxu0 %v2323_v12 }
 0x2e3   :  { %1883 = vmatprep.subr.bf16.mxu1 %v2271_v0  ;;  %1899 = vmatprep.subr.bf16.mxu0 %v2271_v0 }
 0x3b0   :  { %v289_v59 = vpop.f32.mrb[4].mxu0  ;;  %v357_v60 = vpop.f32.mrb[4].mxu1 }
 0x3b1   :  { %v2043_v61 = vadd.f32 %v2393_v58, %v289_v59  ;;  %v364_v62 = vrot.slane %v357_v60, 6  ;;  %v1865_v63 = vpop.f32.mrb[5].mxu0  ;;  %v1873_v1 = vpop.f32.mrb[5].mxu1 }
 0x3b2   :  { %v292_v2 = vpop.f32.mrb[6].mxu0  ;;  %v360_v3 = vpop.f32.mrb[6].mxu1 }
 0x3b3   :  { %2099 = vtanh.f32 %v2043_v61  ;;  %v366_v5 = vadd.f32 %v364_v62, %v2341_v17  ;;  %v1866_v6 = vpop.f32.mrb[7].mxu0  ;;  %v1874_v7 = vpop.f32.mrb[7].mxu1  ;;  %v1723_v11 = vmul.f32 -1.442695, %v2043_v61 }
 0x3b5   :  { %2101 = vtanh.f32 %v366_v5  ;;  %v1725_v13 = vmul.f32 -1.442695, %v366_v5 }
 0x3b6   :  { %2103 = vpow2.f32 %v1723_v11 }
 0x3b7   :  { %2105 = vpow2.f32 %v1725_v13 }
 0x3bd   :  { %v2100_v8 = vpop.eup %2099 }
 0x3be   :  { %308 = vrot.lane.b32.xlu1 %v2100_v8, %s2273_s0 }
 0x3bf   :  { %v2102_v10 = vpop.eup %2101 }
 0x3c0   :  { %379 = vrot.lane.b32.xlu0 %v2102_v10, %s2273_s0  ;;  %v2104_v14 = vpop.eup %2103 }
 0x3c1   :  { %v2106_v15 = vpop.eup %2105  ;;  %v298_v16 = vadd.f32 1.0, %v2104_v14 }
 0x3c2   :  { %303 = vrot.lane.b32.xlu1 %v1718_v9, %s2274_s6  ;;  %v370_v18 = vadd.f32 1.0, %v2106_v15 }
 0x3c3   :  { %2107 = vrcp.f32 %v298_v16 }
 0x3c4   :  { %2109 = vrcp.f32 %v370_v18 }
 0x3cd   :  { %v2108_v19 = vpop.eup %2107 }
 0x3ce   :  { %v2110_v23 = vpop.eup %2109 }
 0x3cf   :  { %v377_v31 = vmul.f32 %v2110_v23, %v375_v28 }
 0x430   :  { %v309_v21 = vpop.permute.xlu1 %308 }
 0x431   :  { %v311_v22 = vmul.f32 %v2108_v19, %v309_v21 }
 0x432   :  { %v380_v24 = vpop.permute.xlu0 %379 }
 0x433   :  { %313 = vrot.lane.b32.xlu0 %v311_v22, %s2274_s6  ;;  %v382_v25 = vmul.f32 %v2110_v23, %v380_v24 }
 0x434   :  { %v304_v26 = vpop.permute.xlu1 %303 }
 0x435   :  { %384 = vrot.lane.b32.xlu1 %v382_v25, %s2274_s6  ;;  %v306_v27 = vmul.f32 %v2108_v19, %v304_v26 }
 0x4a5   :  { %v314_v29 = vpop.permute.xlu0 %313 }
 0x4a6   :  { %v2406_v30 = vadd.f32 %v314_v29, %v306_v27 }
 0x4a7   :  { %v385_v32 = vpop.permute.xlu1 %384 }
 0x4a8   :  { %2111 = vtanh.f32 %v2406_v30  ;;  %v2409_v33 = vadd.f32 %v385_v32, %v377_v31 }
 0x4aa   :  { %2113 = vtanh.f32 %v2409_v33  ;;  %v565_v14 = vrot.slane %v2409_v33, 6 }
 0x4b2   :  { %v2112_v34 = vpop.eup %2111 }
 0x4b3   :  { %319 = vrot.lane.b32.xlu0 %v2112_v34, %s2273_s0 }
 0x4b4   :  { %v2114_v35 = vpop.eup %2113 }
 0x4b5   :  { %390 = vrot.lane.b32.xlu1 %v2114_v35, %s2273_s0 }
 0x525   :  { %v320_v36 = vpop.permute.xlu0 %319 }
 0x526   :  { %v322_v37 = vmul.f32 %v2108_v19, %v320_v36 }
 0x527   :  { %v391_v39 = vpop.permute.xlu1 %390 }
 0x528   :  { %v394_v38 = vpack.c.bf16 %v322_v37, %v322_v37  ;;  %v393_v40 = vmul.f32 %v2110_v23, %v391_v39 }
 0x52a   :  { %396 = vrot.lane.b32.xlu0 %v394_v38, %s2274_s6  ;;  %v441_v41 = vpack.c.bf16 %v393_v40, %v393_v40 }
 0x52c   :  { %v443_v43 = vrot.slane %v441_v41, 1 }
 0x52e   :  { %444 = vrot.lane.b32.xlu1 %v443_v43, %s2274_s6 }
 0x59c   :  { %v397_v45 = vpop.permute.xlu0 %396 }
 0x59d   :  { %1880 = vmatmul.mubr.msk.bf16.vlgmr.msra.gmra.mrb[8].mxu1 %vm131_vm3, %v397_v45 }
 0x59e   :  { %1884 = vmatpush3.bf16.msra.mxu1 %v2365_v49  ;;  %1887 = vmatprep.mubr.msk.bf16.mxu1 %vm2272_vm0, %v2271_v0 }
 0x59f   :  { %1885 = vmatprep.subr.bf16.mxu1 %v2271_v0 }
 0x5a0   :  { %v445_v46 = vpop.permute.xlu1 %444 }
 0x5a1   :  { %1896 = vmatmul.mubr.msk.bf16.vlgmr.msra.gmra.mrb[8].mxu0 %vm131_vm3, %v445_v46 }
 0x5a2   :  { %1886 = vmatpush3.bf16.msra.mxu1 %v2371_v53  ;;  %1900 = vmatpush3.bf16.msra.mxu0 %v2355_v42 }
 0x5a3   :  { %1915 = vmatprep.subr.bf16.mxu1 %v2271_v0  ;;  %1901 = vmatprep.subr.bf16.mxu0 %v2271_v0 }
 0x5a4   :  { %1903 = vmatprep.mubr.msk.bf16.mxu0 %vm2272_vm0, %v2271_v0 }
 0x5a6   :  { %1902 = vmatpush3.bf16.msra.mxu0 %v2358_v44 }
 0x5a7   :  { %1907 = vmatprep.subr.bf16.mxu0 %v2271_v0 }
 0x5a9   :  { %1888 = vmatmul.mubr.msk.bf16.vlgmr.msra.gmra.mrb[8].mxu1 %vm131_vm3, %v445_v46 }
 0x5aa   :  { %1916 = vmatpush3.bf16.msra.mxu1 %v2314_v4  ;;  %1919 = vmatprep.mubr.msk.bf16.mxu1 %vm2272_vm0, %v2271_v0 }
 0x5ab   :  { %1917 = vmatprep.subr.bf16.mxu1 %v2271_v0 }
 0x5ae   :  { %1918 = vmatpush3.bf16.msra.mxu1 %v2323_v12 }
 0x5af   :  { %1923 = vmatprep.subr.bf16.mxu1 %v2271_v0 }
 0x674   :  { %v547_v47 = vpop.f32.mrb[8].mxu0 }
 0x675   :  { %v554_v48 = vrot.slane %v547_v47, 4  ;;  %v1897_v50 = vpop.f32.mrb[9].mxu0 }
 0x676   :  { %v550_v51 = vpop.f32.mrb[10].mxu0 }
 0x677   :  { %v556_v52 = vadd.f32 %v554_v48, %v2341_v17  ;;  %v1898_v54 = vpop.f32.mrb[11].mxu0 }
 0x679   :  { %2115 = vtanh.f32 %v556_v52  ;;  %v1730_v63 = vmul.f32 -1.442695, %v556_v52 }
 0x67c   :  { %v483_v55 = vpop.f32.mrb[8].mxu1 }
 0x67d   :  { %v2044_v56 = vadd.f32 %v2393_v58, %v483_v55  ;;  %v1889_v57 = vpop.f32.mrb[9].mxu1 }
 0x67e   :  { %v486_v59 = vpop.f32.mrb[10].mxu1 }
 0x67f   :  { %2117 = vtanh.f32 %v2044_v56  ;;  %v1890_v60 = vpop.f32.mrb[11].mxu1  ;;  %v1728_v1 = vmul.f32 -1.442695, %v2044_v56 }
 0x680   :  { %2119 = vpow2.f32 %v1730_v63 }
 0x681   :  { %2121 = vpow2.f32 %v1728_v1 }
 0x683   :  { %v2116_v61 = vpop.eup %2115 }
 0x684   :  { %569 = vrot.lane.b32.xlu1 %v2116_v61, %s2273_s0 }
 0x689   :  { %v2118_v62 = vpop.eup %2117 }
 0x68a   :  { %498 = vrot.lane.b32.xlu0 %v2118_v62, %s2273_s0  ;;  %v2120_v2 = vpop.eup %2119 }
 0x68b   :  { %v560_v3 = vadd.f32 1.0, %v2120_v2  ;;  %v2122_v5 = vpop.eup %2121 }
 0x68c   :  { %v492_v6 = vadd.f32 1.0, %v2122_v5 }
 0x68d   :  { %2123 = vrcp.f32 %v560_v3 }
 0x68e   :  { %2125 = vrcp.f32 %v492_v6 }
 0x697   :  { %v2124_v7 = vpop.eup %2123 }
 0x698   :  { %v2126_v10 = vpop.eup %2125  ;;  %v567_v15 = vmul.f32 %v2124_v7, %v565_v14 }
 0x699   :  { %v496_v19 = vmul.f32 %v2126_v10, %v2406_v30 }
 0x6f6   :  { %v570_v8 = vpop.permute.xlu1 %569 }
 0x6f7   :  { %v572_v9 = vmul.f32 %v2124_v7, %v570_v8 }
 0x6f9   :  { %574 = vrot.lane.b32.xlu1 %v572_v9, %s2274_s6 }
 0x6fc   :  { %v499_v11 = vpop.permute.xlu0 %498 }
 0x6fd   :  { %v501_v13 = vmul.f32 %v2126_v10, %v499_v11 }
 0x6ff   :  { %503 = vrot.lane.b32.xlu0 %v501_v13, %s2274_s6 }
 0x76b   :  { %v575_v16 = vpop.permute.xlu1 %574 }
 0x76c   :  { %v2444_v18 = vadd.f32 %v575_v16, %v567_v15 }
 0x76e   :  { %2127 = vtanh.f32 %v2444_v18  ;;  %v755_v63 = vrot.slane %v2444_v18, 6 }
 0x771   :  { %v504_v21 = vpop.permute.xlu0 %503 }
 0x772   :  { %v2448_v22 = vadd.f32 %v504_v21, %v496_v19 }
 0x774   :  { %2129 = vtanh.f32 %v2448_v22 }
 0x778   :  { %v2128_v23 = vpop.eup %2127 }
 0x779   :  { %580 = vrot.lane.b32.xlu1 %v2128_v23, %s2273_s0 }
 0x77e   :  { %v2130_v24 = vpop.eup %2129 }
 0x77f   :  { %509 = vrot.lane.b32.xlu0 %v2130_v24, %s2273_s0 }
 0x7eb   :  { %v581_v25 = vpop.permute.xlu1 %580 }
 0x7ec   :  { %v583_v26 = vmul.f32 %v2124_v7, %v581_v25 }
 0x7ee   :  { %v631_v27 = vpack.c.bf16 %v583_v26, %v583_v26 }
 0x7f0   :  { %v633_v28 = vrot.slane %v631_v27, 2 }
 0x7f1   :  { %v510_v29 = vpop.permute.xlu0 %509 }
 0x7f2   :  { %v512_v31 = vmul.f32 %v2126_v10, %v510_v29  ;;  %634 = vrot.lane.b32.xlu1 %v633_v28, %s2274_s6 }
 0x7f4   :  { %v584_v30 = vpack.c.bf16 %v512_v31, %v512_v31 }
 0x7f6   :  { %586 = vrot.lane.b32.xlu0 %v584_v30, %s2274_s6 }
 0x864   :  { %v635_v32 = vpop.permute.xlu1 %634 }
 0x865   :  { %1920 = vmatmul.mubr.msk.bf16.vlgmr.msra.gmra.mrb[12].mxu1 %vm131_vm3, %v635_v32 }
 0x866   :  { %1924 = vmatpush3.bf16.msra.mxu1 %v2355_v42  ;;  %1927 = vmatprep.mubr.msk.bf16.mxu1 %vm2272_vm0, %v2271_v0 }
 0x867   :  { %1925 = vmatprep.subr.bf16.mxu1 %v2271_v0 }
 0x868   :  { %v587_v33 = vpop.permute.xlu0 %586 }
 0x869   :  { %1904 = vmatmul.mubr.msk.bf16.vlgmr.msra.gmra.mrb[12].mxu0 %vm131_vm3, %v587_v33 }
 0x86a   :  { %1908 = vmatpush3.bf16.msra.mxu0 %v2365_v49  ;;  %1911 = vmatprep.mubr.msk.bf16.mxu0 %vm2272_vm0, %v2271_v0 }
 0x86b   :  { %1909 = vmatprep.subr.bf16.mxu0 %v2271_v0  ;;  %1926 = vmatpush3.bf16.msra.mxu1 %v2358_v44 }
 0x86c   :  { %1931 = vmatprep.subr.bf16.mxu1 %v2271_v0 }
 0x86e   :  { %1910 = vmatpush3.bf16.msra.mxu0 %v2371_v53 }
 0x86f   :  { %1939 = vmatprep.subr.bf16.mxu0 %v2271_v0 }
 0x875   :  { %1912 = vmatmul.mubr.msk.bf16.vlgmr.msra.gmra.mrb[12].mxu0 %vm131_vm3, %v635_v32 }
 0x876   :  { %1940 = vmatpush3.bf16.msra.mxu0 %v2314_v4  ;;  %1943 = vmatprep.mubr.msk.bf16.mxu0 %vm2272_vm0, %v2271_v0 }
 0x877   :  { %1941 = vmatprep.subr.bf16.mxu0 %v2271_v0 }
 0x87a   :  { %1942 = vmatpush3.bf16.msra.mxu0 %v2323_v12 }
 0x87b   :  { %1947 = vmatprep.subr.bf16.mxu0 %v2271_v0 }
 0x938   :  { %v737_v34 = vpop.f32.mrb[12].mxu1 }
 0x939   :  { %v744_v35 = vrot.slane %v737_v34, 2  ;;  %v1921_v36 = vpop.f32.mrb[13].mxu1 }
 0x93a   :  { %v740_v37 = vpop.f32.mrb[14].mxu1 }
 0x93b   :  { %v746_v38 = vadd.f32 %v744_v35, %v2341_v17  ;;  %v1922_v39 = vpop.f32.mrb[15].mxu1 }
 0x93d   :  { %2131 = vtanh.f32 %v746_v38  ;;  %v1735_v50 = vmul.f32 -1.442695, %v746_v38 }
 0x947   :  { %v2132_v40 = vpop.eup %2131 }
 0x948   :  { %v673_v41 = vpop.f32.mrb[12].mxu0  ;;  %759 = vrot.lane.b32.xlu1 %v2132_v40, %s2273_s0 }
 0x949   :  { %v2045_v43 = vadd.f32 %v2393_v58, %v673_v41  ;;  %v1913_v45 = vpop.f32.mrb[13].mxu0 }
 0x94a   :  { %v676_v46 = vpop.f32.mrb[14].mxu0 }
 0x94b   :  { %2133 = vtanh.f32 %v2045_v43  ;;  %v1914_v47 = vpop.f32.mrb[15].mxu0  ;;  %v1733_v51 = vmul.f32 -1.442695, %v2045_v43 }
 0x94c   :  { %2135 = vpow2.f32 %v1735_v50 }
 0x94d   :  { %2137 = vpow2.f32 %v1733_v51 }
 0x955   :  { %v2134_v48 = vpop.eup %2133 }
 0x956   :  { %688 = vrot.lane.b32.xlu0 %v2134_v48, %s2273_s0  ;;  %v2136_v52 = vpop.eup %2135 }
 0x957   :  { %v750_v17 = vadd.f32 1.0, %v2136_v52  ;;  %v2138_v54 = vpop.eup %2137 }
 0x958   :  { %v682_v55 = vadd.f32 1.0, %v2138_v54 }
 0x959   :  { %2139 = vrcp.f32 %v750_v17 }
 0x95a   :  { %2141 = vrcp.f32 %v682_v55 }
 0x963   :  { %v2140_v56 = vpop.eup %2139 }
 0x964   :  { %v2142_v60 = vpop.eup %2141  ;;  %v757_v1 = vmul.f32 %v2140_v56, %v755_v63 }
 0x965   :  { %v686_v5 = vmul.f32 %v2142_v60, %v2448_v22 }
 0x9ba   :  { %v760_v57 = vpop.permute.xlu1 %759 }
 0x9bb   :  { %v762_v59 = vmul.f32 %v2140_v56, %v760_v57 }
 0x9bd   :  { %764 = vrot.lane.b32.xlu1 %v762_v59, %s2274_s6 }
 0x9c8   :  { %v689_v61 = vpop.permute.xlu0 %688 }
 0x9c9   :  { %v691_v62 = vmul.f32 %v2142_v60, %v689_v61 }
 0x9cb   :  { %693 = vrot.lane.b32.xlu0 %v691_v62, %s2274_s6 }
 0xa2f   :  { %v765_v2 = vpop.permute.xlu1 %764 }
 0xa30   :  { %v2483_v3 = vadd.f32 %v765_v2, %v757_v1 }
 0xa32   :  { %2143 = vtanh.f32 %v2483_v3  ;;  %v942_v48 = vrot.slane %v2483_v3, 6 }
 0xa3c   :  { %v2144_v6 = vpop.eup %2143 }
 0xa3d   :  { %v694_v7 = vpop.permute.xlu0 %693  ;;  %770 = vrot.lane.b32.xlu1 %v2144_v6, %s2273_s0 }
 0xa3e   :  { %v2488_v8 = vadd.f32 %v694_v7, %v686_v5 }
 0xa40   :  { %2145 = vtanh.f32 %v2488_v8 }
 0xa4a   :  { %v2146_v9 = vpop.eup %2145 }
 0xa4b   :  { %699 = vrot.lane.b32.xlu0 %v2146_v9, %s2273_s0 }
 0xaaf   :  { %v771_v10 = vpop.permute.xlu1 %770 }
 0xab0   :  { %v773_v11 = vmul.f32 %v2140_v56, %v771_v10 }
 0xab2   :  { %v821_v13 = vpack.c.bf16 %v773_v11, %v773_v11 }
 0xab4   :  { %v823_v14 = vrot.slane %v821_v13, 3 }
 0xab6   :  { %824 = vrot.lane.b32.xlu1 %v823_v14, %s2274_s6 }
 0xabd   :  { %v700_v15 = vpop.permute.xlu0 %699 }
 0xabe   :  { %v702_v16 = vmul.f32 %v2142_v60, %v700_v15 }
 0xac0   :  { %v774_v18 = vpack.c.bf16 %v702_v16, %v702_v16 }
 0xac2   :  { %776 = vrot.lane.b32.xlu0 %v774_v18, %s2274_s6 }
 0xb28   :  { %v825_v19 = vpop.permute.xlu1 %824 }
 0xb29   :  { %1944 = vmatmul.mubr.msk.bf16.vlgmr.msra.gmra.mrb[16].mxu0 %vm131_vm3, %v825_v19 }
 0xb2a   :  { %1948 = vmatpush3.bf16.msra.mxu0 %v2355_v42  ;;  %1951 = vmatprep.mubr.msk.bf16.mxu0 %vm2272_vm0, %v2271_v0 }
 0xb2b   :  { %1949 = vmatprep.subr.bf16.mxu0 %v2271_v0 }
 0xb2e   :  { %1950 = vmatpush3.bf16.msra.mxu0 %v2358_v44 }
 0xb2f   :  { %1955 = vmatprep.subr.bf16.mxu0 %v2271_v0 }
 0xb34   :  { %v777_v21 = vpop.permute.xlu0 %776 }
 0xb35   :  { %1928 = vmatmul.mubr.msk.bf16.vlgmr.msra.gmra.mrb[16].mxu1 %vm131_vm3, %v777_v21 }
 0xb36   :  { %1932 = vmatpush3.bf16.msra.mxu1 %v2365_v49  ;;  %1935 = vmatprep.mubr.msk.bf16.mxu1 %vm2272_vm0, %v2271_v0 }
 0xb37   :  { %1933 = vmatprep.subr.bf16.mxu1 %v2271_v0 }
 0xb3a   :  { %1934 = vmatpush3.bf16.msra.mxu1 %v2371_v53 }
 0xb3b   :  { %1963 = vmatprep.subr.bf16.mxu1 %v2271_v0 }
 0xb41   :  { %1936 = vmatmul.mubr.msk.bf16.vlgmr.msra.gmra.mrb[16].mxu1 %vm131_vm3, %v825_v19 }
 0xb42   :  { %1964 = vmatpush3.bf16.msra.mxu1 %v2314_v4  ;;  %1967 = vmatprep.mubr.msk.bf16.mxu1 %vm2272_vm0, %v2271_v0 }
 0xb43   :  { %1965 = vmatprep.subr.bf16.mxu1 %v2271_v0 }
 0xb46   :  { %1966 = vmatpush3.bf16.msra.mxu1 %v2323_v12 }
 0xb47   :  { %1971 = vmatprep.subr.bf16.mxu1 %v2271_v0 }
 0xbfc   :  { %v927_v22 = vpop.f32.mrb[16].mxu0 }
 0xbfd   :  { %v933_v23 = vadd.f32 %v927_v22, %v2343_v20  ;;  %v1945_v24 = vpop.f32.mrb[17].mxu0 }
 0xbfe   :  { %v930_v25 = vpop.f32.mrb[18].mxu0 }
 0xbff   :  { %2147 = vtanh.f32 %v933_v23  ;;  %v1946_v26 = vpop.f32.mrb[19].mxu0  ;;  %v1740_v34 = vmul.f32 -1.442695, %v933_v23 }
 0xc09   :  { %v2148_v27 = vpop.eup %2147 }
 0xc0a   :  { %946 = vrot.lane.b32.xlu1 %v2148_v27, %s2273_s0 }
 0xc14   :  { %v863_v28 = vpop.f32.mrb[16].mxu1 }
 0xc15   :  { %v2046_v29 = vadd.f32 %v2393_v58, %v863_v28  ;;  %v1937_v31 = vpop.f32.mrb[17].mxu1 }
 0xc16   :  { %v866_v30 = vpop.f32.mrb[18].mxu1 }
 0xc17   :  { %2149 = vtanh.f32 %v2046_v29  ;;  %v1938_v32 = vpop.f32.mrb[19].mxu1  ;;  %v1738_v37 = vmul.f32 -1.442695, %v2046_v29 }
 0xc18   :  { %2151 = vpow2.f32 %v1740_v34 }
 0xc21   :  { %v2150_v33 = vpop.eup %2149 }
 0xc22   :  { %878 = vrot.lane.b32.xlu0 %v2150_v33, %s2273_s0  ;;  %v2152_v35 = vpop.eup %2151 }
 0xc23   :  { %v937_v36 = vadd.f32 1.0, %v2152_v35 }
 0xc25   :  { %2153 = vrcp.f32 %v937_v36 }
 0xc26   :  { %2155 = vpow2.f32 %v1738_v37 }
 0xc2f   :  { %v2154_v38 = vpop.eup %2153 }
 0xc30   :  { %v2156_v41 = vpop.eup %2155  ;;  %v944_v50 = vmul.f32 %v2154_v38, %v942_v48 }
 0xc31   :  { %v872_v43 = vadd.f32 1.0, %v2156_v41 }
 0xc33   :  { %2157 = vrcp.f32 %v872_v43 }
 0xc3d   :  { %v2158_v45 = vpop.eup %2157 }
 0xc3e   :  { %v876_v54 = vmul.f32 %v2158_v45, %v2488_v8 }
 0xc7c   :  { %v947_v39 = vpop.permute.xlu1 %946 }
 0xc7d   :  { %v949_v40 = vmul.f32 %v2154_v38, %v947_v39 }
 0xc7f   :  { %951 = vrot.lane.b32.xlu1 %v949_v40, %s2274_s6 }
 0xc94   :  { %v879_v46 = vpop.permute.xlu0 %878 }
 0xc95   :  { %v881_v47 = vmul.f32 %v2158_v45, %v879_v46 }
 0xc97   :  { %883 = vrot.lane.b32.xlu0 %v881_v47, %s2274_s6 }
 0xcf1   :  { %v952_v51 = vpop.permute.xlu1 %951 }
 0xcf2   :  { %v2522_v52 = vadd.f32 %v952_v51, %v944_v50 }
 0xcf4   :  { %2159 = vtanh.f32 %v2522_v52  ;;  %v1131_v33 = vrot.slane %v2522_v52, 6 }
 0xcfe   :  { %v2160_v17 = vpop.eup %2159 }
 0xcff   :  { %957 = vrot.lane.b32.xlu1 %v2160_v17, %s2273_s0 }
 0xd09   :  { %v884_v55 = vpop.permute.xlu0 %883 }
 0xd0a   :  { %v2527_v56 = vadd.f32 %v884_v55, %v876_v54 }
 0xd0c   :  { %2161 = vtanh.f32 %v2527_v56 }
 0xd16   :  { %v2162_v57 = vpop.eup %2161 }
 0xd17   :  { %889 = vrot.lane.b32.xlu0 %v2162_v57, %s2273_s0 }
 0xd71   :  { %v958_v59 = vpop.permute.xlu1 %957 }
 0xd72   :  { %v960_v60 = vmul.f32 %v2154_v38, %v958_v59 }
 0xd74   :  { %v1008_v61 = vpack.c.bf16 %v960_v60, %v960_v60 }
 0xd76   :  { %1010 = vrot.lane.b32.xlu1 %v1008_v61, %s2274_s6 }
 0xd89   :  { %v890_v62 = vpop.permute.xlu0 %889 }
 0xd8a   :  { %v892_v63 = vmul.f32 %v2158_v45, %v890_v62 }
 0xd8c   :  { %v961_v1 = vpack.c.bf16 %v892_v63, %v892_v63 }
 0xd8e   :  { %963 = vrot.lane.b32.xlu0 %v961_v1, %s2274_s6 }
 0xde8   :  { %v1011_v2 = vpop.permute.xlu1 %1010 }
 0xde9   :  { %1968 = vmatmul.mubr.msk.bf16.vlgmr.msra.gmra.mrb[20].mxu1 %vm131_vm3, %v1011_v2 }
 0xdea   :  { %1972 = vmatpush3.bf16.msra.mxu1 %v2355_v42  ;;  %1975 = vmatprep.mubr.msk.bf16.mxu1 %vm2272_vm0, %v2271_v0 }
 0xdeb   :  { %1973 = vmatprep.subr.bf16.mxu1 %v2271_v0 }
 0xdee   :  { %1974 = vmatpush3.bf16.msra.mxu1 %v2358_v44 }
 0xdef   :  { %1979 = vmatprep.subr.bf16.mxu1 %v2271_v0 }
 0xe00   :  { %v964_v3 = vpop.permute.xlu0 %963 }
 0xe01   :  { %1952 = vmatmul.mubr.msk.bf16.vlgmr.msra.gmra.mrb[20].mxu0 %vm131_vm3, %v964_v3 }
 0xe02   :  { %1956 = vmatpush3.bf16.msra.mxu0 %v2365_v49  ;;  %1959 = vmatprep.mubr.msk.bf16.mxu0 %vm2272_vm0, %v2271_v0 }
 0xe03   :  { %1957 = vmatprep.subr.bf16.mxu0 %v2271_v0 }
 0xe06   :  { %1958 = vmatpush3.bf16.msra.mxu0 %v2371_v53 }
 0xe07   :  { %1987 = vmatprep.subr.bf16.mxu0 %v2271_v0 }
 0xe0d   :  { %1960 = vmatmul.mubr.msk.bf16.vlgmr.msra.gmra.mrb[20].mxu0 %vm131_vm3, %v1011_v2 }
 0xe0e   :  { %1988 = vmatpush3.bf16.msra.mxu0 %v2314_v4  ;;  %1991 = vmatprep.mubr.msk.bf16.mxu0 %vm2272_vm0, %v2271_v0 }
 0xe0f   :  { %1989 = vmatprep.subr.bf16.mxu0 %v2271_v0 }
 0xe12   :  { %1990 = vmatpush3.bf16.msra.mxu0 %v2323_v12 }
 0xe13   :  { %1995 = vmatprep.subr.bf16.mxu0 %v2271_v0 }
 0xebc   :  { %v1113_v5 = vpop.f32.mrb[20].mxu1 }
 0xebd   :  { %v1120_v6 = vrot.slane %v1113_v5, 6  ;;  %v1969_v7 = vpop.f32.mrb[21].mxu1 }
 0xebe   :  { %v1116_v8 = vpop.f32.mrb[22].mxu1 }
 0xebf   :  { %v1122_v9 = vadd.f32 %v1120_v6, %v2343_v20  ;;  %v1970_v10 = vpop.f32.mrb[23].mxu1 }
 0xec1   :  { %2163 = vtanh.f32 %v1122_v9  ;;  %v1745_v21 = vmul.f32 -1.442695, %v1122_v9 }
 0xecb   :  { %v2164_v11 = vpop.eup %2163 }
 0xecc   :  { %1135 = vrot.lane.b32.xlu1 %v2164_v11, %s2273_s0 }
 0xee0   :  { %v1049_v13 = vpop.f32.mrb[20].mxu0 }
 0xee1   :  { %v2047_v14 = vadd.f32 %v2393_v58, %v1049_v13  ;;  %v1961_v15 = vpop.f32.mrb[21].mxu0 }
 0xee2   :  { %v1052_v16 = vpop.f32.mrb[22].mxu0 }
 0xee3   :  { %2165 = vtanh.f32 %v2047_v14  ;;  %v1962_v18 = vpop.f32.mrb[23].mxu0  ;;  %v1743_v27 = vmul.f32 -1.442695, %v2047_v14 }
 0xee4   :  { %2167 = vpow2.f32 %v1745_v21 }
 0xeed   :  { %v2166_v19 = vpop.eup %2165 }
 0xeee   :  { %1064 = vrot.lane.b32.xlu0 %v2166_v19, %s2273_s0  ;;  %v2168_v22 = vpop.eup %2167 }
 0xeef   :  { %v1126_v23 = vadd.f32 1.0, %v2168_v22 }
 0xef1   :  { %2169 = vrcp.f32 %v1126_v23 }
 0xef2   :  { %2171 = vpow2.f32 %v1743_v27 }
 0xefb   :  { %v2170_v24 = vpop.eup %2169 }
 0xefc   :  { %v2172_v28 = vpop.eup %2171  ;;  %v1133_v34 = vmul.f32 %v2170_v24, %v1131_v33 }
 0xefd   :  { %v1058_v29 = vadd.f32 1.0, %v2172_v28 }
 0xeff   :  { %2173 = vrcp.f32 %v1058_v29 }
 0xf09   :  { %v2174_v31 = vpop.eup %2173 }
 0xf0a   :  { %v1062_v38 = vmul.f32 %v2174_v31, %v2527_v56 }
 0xf3e   :  { %v1136_v25 = vpop.permute.xlu1 %1135 }
 0xf3f   :  { %v1138_v26 = vmul.f32 %v2170_v24, %v1136_v25 }
 0xf41   :  { %1140 = vrot.lane.b32.xlu1 %v1138_v26, %s2274_s6 }
 0xf60   :  { %v1065_v30 = vpop.permute.xlu0 %1064 }
 0xf61   :  { %v1067_v32 = vmul.f32 %v2174_v31, %v1065_v30 }
 0xf63   :  { %1069 = vrot.lane.b32.xlu0 %v1067_v32, %s2274_s6 }
 0xfb3   :  { %v1141_v35 = vpop.permute.xlu1 %1140 }
 0xfb4   :  { %v2561_v36 = vadd.f32 %v1141_v35, %v1133_v34 }
 0xfb6   :  { %2175 = vtanh.f32 %v2561_v36  ;;  %v1321_v18 = vrot.slane %v2561_v36, 6 }
 0xfc0   :  { %v2176_v37 = vpop.eup %2175 }
 0xfc1   :  { %1146 = vrot.lane.b32.xlu1 %v2176_v37, %s2273_s0 }
 0xfd5   :  { %v1070_v39 = vpop.permute.xlu0 %1069 }
 0xfd6   :  { %v2566_v40 = vadd.f32 %v1070_v39, %v1062_v38 }
 0xfd8   :  { %2177 = vtanh.f32 %v2566_v40 }
 0xfe2   :  { %v2178_v41 = vpop.eup %2177 }
 0xfe3   :  { %1075 = vrot.lane.b32.xlu0 %v2178_v41, %s2273_s0 }
0x1033   :  { %v1147_v43 = vpop.permute.xlu1 %1146 }
0x1034   :  { %v1149_v45 = vmul.f32 %v2170_v24, %v1147_v43 }
0x1036   :  { %v1197_v46 = vpack.c.bf16 %v1149_v45, %v1149_v45 }
0x1038   :  { %v1199_v47 = vrot.slane %v1197_v46, 1 }
0x103a   :  { %1200 = vrot.lane.b32.xlu1 %v1199_v47, %s2274_s6 }
0x1055   :  { %v1076_v48 = vpop.permute.xlu0 %1075 }
0x1056   :  { %v1078_v50 = vmul.f32 %v2174_v31, %v1076_v48 }
0x1058   :  { %v1150_v51 = vpack.c.bf16 %v1078_v50, %v1078_v50 }
0x105a   :  { %1152 = vrot.lane.b32.xlu0 %v1150_v51, %s2274_s6 }
0x10ac   :  { %v1201_v52 = vpop.permute.xlu1 %1200 }
0x10ad   :  { %1992 = vmatmul.mubr.msk.bf16.vlgmr.msra.gmra.mrb[24].mxu0 %vm131_vm3, %v1201_v52 }
0x10ae   :  { %1996 = vmatpush3.bf16.msra.mxu0 %v2355_v42  ;;  %1999 = vmatprep.mubr.msk.bf16.mxu0 %vm2272_vm0, %v2271_v0 }
0x10af   :  { %1997 = vmatprep.subr.bf16.mxu0 %v2271_v0 }
0x10b2   :  { %1998 = vmatpush3.bf16.msra.mxu0 %v2358_v44 }
0x10b3   :  { %2003 = vmatprep.subr.bf16.mxu0 %v2271_v0 }
0x10cc   :  { %v1153_v17 = vpop.permute.xlu0 %1152 }
0x10cd   :  { %1976 = vmatmul.mubr.msk.bf16.vlgmr.msra.gmra.mrb[24].mxu1 %vm131_vm3, %v1153_v17 }
0x10ce   :  { %1980 = vmatpush3.bf16.msra.mxu1 %v2365_v49  ;;  %1983 = vmatprep.mubr.msk.bf16.mxu1 %vm2272_vm0, %v2271_v0 }
0x10cf   :  { %1981 = vmatprep.subr.bf16.mxu1 %v2271_v0 }
0x10d2   :  { %1982 = vmatpush3.bf16.msra.mxu1 %v2371_v53 }
0x10d3   :  { %2011 = vmatprep.subr.bf16.mxu1 %v2271_v0 }
0x10d9   :  { %1984 = vmatmul.mubr.msk.bf16.vlgmr.msra.gmra.mrb[24].mxu1 %vm131_vm3, %v1201_v52 }
0x10da   :  { %2012 = vmatpush3.bf16.msra.mxu1 %v2314_v4  ;;  %2015 = vmatprep.mubr.msk.bf16.mxu1 %vm2272_vm0, %v2271_v0 }
0x10db   :  { %2013 = vmatprep.subr.bf16.mxu1 %v2271_v0 }
0x10de   :  { %2014 = vmatpush3.bf16.msra.mxu1 %v2323_v12 }
0x10df   :  { %2019 = vmatprep.subr.bf16.mxu1 %v2271_v0 }
0x1180   :  { %v1303_v54 = vpop.f32.mrb[24].mxu0 }
0x1181   :  { %v1310_v55 = vrot.slane %v1303_v54, 4  ;;  %v1993_v56 = vpop.f32.mrb[25].mxu0 }
0x1182   :  { %v1306_v57 = vpop.f32.mrb[26].mxu0 }
0x1183   :  { %v1312_v59 = vadd.f32 %v1310_v55, %v2343_v20  ;;  %v1994_v60 = vpop.f32.mrb[27].mxu0 }
0x1185   :  { %2179 = vtanh.f32 %v1312_v59  ;;  %v1750_v3 = vmul.f32 -1.442695, %v1312_v59 }
0x118f   :  { %v2180_v61 = vpop.eup %2179 }
0x1190   :  { %1325 = vrot.lane.b32.xlu1 %v2180_v61, %s2273_s0 }
0x11ac   :  { %v1239_v4 = vpop.f32.mrb[24].mxu1 }
0x11ad   :  { %v2048_v62 = vadd.f32 %v2393_v58, %v1239_v4  ;;  %v1985_v63 = vpop.f32.mrb[25].mxu1 }
0x11ae   :  { %v1242_v1 = vpop.f32.mrb[26].mxu1 }
0x11af   :  { %2181 = vtanh.f32 %v2048_v62  ;;  %v1986_v12 = vpop.f32.mrb[27].mxu1  ;;  %v1748_v10 = vmul.f32 -1.442695, %v2048_v62 }
0x11b0   :  { %2183 = vpow2.f32 %v1750_v3 }
0x11b9   :  { %v2182_v2 = vpop.eup %2181 }
0x11ba   :  { %1254 = vrot.lane.b32.xlu0 %v2182_v2, %s2273_s0  ;;  %v2184_v5 = vpop.eup %2183 }
0x11bb   :  { %v1316_v6 = vadd.f32 1.0, %v2184_v5 }
0x11bd   :  { %2185 = vrcp.f32 %v1316_v6 }
0x11be   :  { %2187 = vpow2.f32 %v1748_v10 }
0x11c7   :  { %v2186_v7 = vpop.eup %2185 }
0x11c8   :  { %v2188_v11 = vpop.eup %2187  ;;  %v1323_v19 = vmul.f32 %v2186_v7, %v1321_v18 }
0x11c9   :  { %v1248_v13 = vadd.f32 1.0, %v2188_v11 }
0x11cb   :  { %2189 = vrcp.f32 %v1248_v13 }
0x11d5   :  { %v2190_v14 = vpop.eup %2189 }
0x11d6   :  { %v1252_v24 = vmul.f32 %v2190_v14, %v2566_v40 }
0x1202   :  { %v1326_v8 = vpop.permute.xlu1 %1325 }
0x1203   :  { %v1328_v9 = vmul.f32 %v2186_v7, %v1326_v8 }
0x1205   :  { %1330 = vrot.lane.b32.xlu1 %v1328_v9, %s2274_s6 }
0x122c   :  { %v1255_v15 = vpop.permute.xlu0 %1254 }
0x122d   :  { %v1257_v16 = vmul.f32 %v2190_v14, %v1255_v15 }
0x122f   :  { %1259 = vrot.lane.b32.xlu0 %v1257_v16, %s2274_s6 }
0x1277   :  { %v1331_v21 = vpop.permute.xlu1 %1330 }
0x1278   :  { %v2600_v22 = vadd.f32 %v1331_v21, %v1323_v19  ;;  %v2219_v19 = vld [vmem:[#allocation2 + $0x70] ss:$0 sm:$0xff] }
0x127a   :  { %2191 = vtanh.f32 %v2600_v22  ;;  %v1511_v4 = vrot.slane %v2600_v22, 6 }
0x1284   :  { %v2192_v23 = vpop.eup %2191 }
0x1285   :  { %1336 = vrot.lane.b32.xlu1 %v2192_v23, %s2273_s0 }
0x12a1   :  { %v1260_v25 = vpop.permute.xlu0 %1259 }
0x12a2   :  { %v2605_v26 = vadd.f32 %v1260_v25, %v1252_v24 }
0x12a4   :  { %2193 = vtanh.f32 %v2605_v26 }
0x12ae   :  { %v2194_v27 = vpop.eup %2193 }
0x12af   :  { %1265 = vrot.lane.b32.xlu0 %v2194_v27, %s2273_s0 }
0x12f7   :  { %v1337_v28 = vpop.permute.xlu1 %1336 }
0x12f8   :  { %v1339_v29 = vmul.f32 %v2186_v7, %v1337_v28 }
0x12fa   :  { %v1387_v31 = vpack.c.bf16 %v1339_v29, %v1339_v29 }
0x12fc   :  { %v1389_v30 = vrot.slane %v1387_v31, 2 }
0x12fe   :  { %1390 = vrot.lane.b32.xlu1 %v1389_v30, %s2274_s6 }
0x1321   :  { %v1266_v32 = vpop.permute.xlu0 %1265 }
0x1322   :  { %v1268_v33 = vmul.f32 %v2190_v14, %v1266_v32 }
0x1324   :  { %v1340_v34 = vpack.c.bf16 %v1268_v33, %v1268_v33  ;;  %v56_v33 = vld [vmem:[#allocation2 + $0x78] sm:$0xff] }
0x1326   :  { %1342 = vrot.lane.b32.xlu0 %v1340_v34, %s2274_s6  ;;  %v57_v34 = vld [vmem:[#allocation2 + $0x80] sm:$0xff] }
0x1370   :  { %v1391_v35 = vpop.permute.xlu1 %1390 }
0x1371   :  { %2016 = vmatmul.mubr.msk.bf16.vlgmr.msra.gmra.mrb[28].mxu1 %vm131_vm3, %v1391_v35 }
0x1372   :  { %2020 = vmatpush3.bf16.msra.mxu1 %v2355_v42  ;;  %2023 = vmatprep.mubr.msk.bf16.mxu1 %vm2272_vm0, %v2271_v0 }
0x1373   :  { %2021 = vmatprep.subr.bf16.mxu1 %v2271_v0 }
0x1376   :  { %2022 = vmatpush3.bf16.msra.mxu1 %v2358_v44 }
0x1377   :  { %2027 = vmatprep.subr.bf16.mxu1 %v2271_v0 }
0x1398   :  { %v1343_v36 = vpop.permute.xlu0 %1342 }
0x1399   :  { %2000 = vmatmul.mubr.msk.bf16.vlgmr.msra.gmra.mrb[28].mxu0 %vm131_vm3, %v1343_v36  ;;  %v60_v36 = vpack.c.bf16 %v57_v34, %v56_v33 }
0x139a   :  { %2004 = vmatpush3.bf16.msra.mxu0 %v2365_v49  ;;  %2007 = vmatprep.mubr.msk.bf16.mxu0 %vm2272_vm0, %v2271_v0 }
0x139b   :  { %2005 = vmatprep.subr.bf16.mxu0 %v2271_v0 }
0x139e   :  { %2006 = vmatpush3.bf16.msra.mxu0 %v2371_v53 }
0x139f   :  { %2035 = vmatprep.subr.bf16.mxu0 %v2271_v0 }
0x13a5   :  { %2008 = vmatmul.mubr.msk.bf16.vlgmr.msra.gmra.mrb[28].mxu0 %vm131_vm3, %v1391_v35  ;;  %v58_v35 = vld [vmem:[#allocation2 + $0x88] sm:$0xff] }
0x13a6   :  { %2039 = vmatprep.mubr.msk.bf16.mxu0 %vm2272_vm0, %v2271_v0  ;;  %2036 = vmatpush3.bf16.msra.mxu0 %v60_v36 }
0x13a7   :  { %2037 = vmatprep.subr.bf16.mxu0 %v2271_v0 }
0x1444   :  { %v1493_v42 = vpop.f32.mrb[28].mxu1 }
0x1445   :  { %v1500_v44 = vrot.slane %v1493_v42, 2  ;;  %v2017_v37 = vpop.f32.mrb[29].mxu1  ;;  %v59_v42 = vld [vmem:[#allocation2 + $0x90] sm:$0xff] }
0x1446   :  { %v1496_v38 = vpop.f32.mrb[30].mxu1 }
0x1447   :  { %v1502_v39 = vadd.f32 %v1500_v44, %v2343_v20  ;;  %v2018_v40 = vpop.f32.mrb[31].mxu1  ;;  %v61_v44 = vpack.c.bf16 %v59_v42, %v58_v35 }
0x1449   :  { %2195 = vtanh.f32 %v1502_v39  ;;  %v1755_v51 = vmul.f32 -1.442695, %v1502_v39  ;;  %2038 = vmatpush3.bf16.msra.mxu0 %v61_v44 }
0x1453   :  { %v2196_v41 = vpop.eup %2195 }
0x1454   :  { %1515 = vrot.lane.b32.xlu1 %v2196_v41, %s2273_s0 }
0x1478   :  { %v1429_v43 = vpop.f32.mrb[28].mxu0 }
0x1479   :  { %v2049_v45 = vadd.f32 %v2393_v58, %v1429_v43  ;;  %v2009_v46 = vpop.f32.mrb[29].mxu0  ;;  %v1713_v43 = vld [vmem:[#allocation2 + $0x98] ss:$0 sm:$0xff] }
0x147a   :  { %v1432_v47 = vpop.f32.mrb[30].mxu0 }
0x147b   :  { %2197 = vtanh.f32 %v2049_v45  ;;  %v2010_v48 = vpop.f32.mrb[31].mxu0  ;;  %v1753_v56 = vmul.f32 -1.442695, %v2049_v45 }
0x147c   :  { %2199 = vpow2.f32 %v1755_v51 }
0x1485   :  { %v2198_v50 = vpop.eup %2197 }
0x1486   :  { %1444 = vrot.lane.b32.xlu0 %v2198_v50, %s2273_s0  ;;  %v2200_v52 = vpop.eup %2199 }
0x1487   :  { %v1506_v17 = vadd.f32 1.0, %v2200_v52 }
0x1489   :  { %2201 = vrcp.f32 %v1506_v17 }
0x148a   :  { %2203 = vpow2.f32 %v1753_v56 }
0x1493   :  { %v2202_v20 = vpop.eup %2201 }
0x1494   :  { %v2204_v58 = vpop.eup %2203  ;;  %v1513_v62 = vmul.f32 %v2202_v20, %v1511_v4 }
0x1495   :  { %v1438_v57 = vadd.f32 1.0, %v2204_v58 }
0x1497   :  { %2205 = vrcp.f32 %v1438_v57 }
0x14a1   :  { %v2206_v59 = vpop.eup %2205 }
0x14a2   :  { %v1442_v2 = vmul.f32 %v2206_v59, %v2605_v26 }
0x14c6   :  { %v1516_v54 = vpop.permute.xlu1 %1515 }
0x14c7   :  { %v1518_v55 = vmul.f32 %v2202_v20, %v1516_v54 }
0x14c9   :  { %1520 = vrot.lane.b32.xlu1 %v1518_v55, %s2274_s6 }
0x14f8   :  { %v1445_v60 = vpop.permute.xlu0 %1444 }
0x14f9   :  { %v1447_v61 = vmul.f32 %v2206_v59, %v1445_v60 }
0x14fb   :  { %1449 = vrot.lane.b32.xlu0 %v1447_v61, %s2274_s6 }
0x153b   :  { %v1521_v63 = vpop.permute.xlu1 %1520 }
0x153c   :  { %v1523_v1 = vadd.f32 %v1521_v63, %v1513_v62 }
0x153e   :  { %2207 = vtanh.f32 %v1523_v1 }
0x1548   :  { %v2208_v12 = vpop.eup %2207 }
0x1549   :  { %1526 = vrot.lane.b32.xlu1 %v2208_v12, %s2273_s0 }
0x156d   :  { %v1450_v3 = vpop.permute.xlu0 %1449 }
0x156e   :  { %v1452_v5 = vadd.f32 %v1450_v3, %v1442_v2 }
0x1570   :  { %2209 = vtanh.f32 %v1452_v5 }
0x157a   :  { %v2210_v6 = vpop.eup %2209 }
0x157b   :  { %1455 = vrot.lane.b32.xlu0 %v2210_v6, %s2273_s0 }
0x15bb   :  { %v1527_v7 = vpop.permute.xlu1 %1526 }
0x15bc   :  { %v1529_v8 = vmul.f32 %v2202_v20, %v1527_v7 }
0x15be   :  { %v1577_v9 = vpack.c.bf16 %v1529_v8, %v1529_v8 }
0x15c0   :  { %v1579_v10 = vrot.slane %v1577_v9, 3 }
0x15c2   :  { %1580 = vrot.lane.b32.xlu1 %v1579_v10, %s2274_s6 }
0x15ed   :  { %v1456_v11 = vpop.permute.xlu0 %1455 }
0x15ee   :  { %v1458_v13 = vmul.f32 %v2206_v59, %v1456_v11 }
0x15f0   :  { %v1530_v14 = vpack.c.bf16 %v1458_v13, %v1458_v13 }
0x15f2   :  { %1532 = vrot.lane.b32.xlu0 %v1530_v14, %s2274_s6 }
0x1634   :  { %v1581_v16 = vpop.permute.xlu1 %1580 }
0x1664   :  { %v1533_v15 = vpop.permute.xlu0 %1532 }
0x1665   :  { %2024 = vmatmul.mubr.msk.bf16.vlgmr.msra.gmra.mrb[32].mxu1 %vm131_vm3, %v1533_v15 }
0x1666   :  { %2028 = vmatpush3.bf16.msra.mxu1 %v2365_v49  ;;  %2031 = vmatprep.mubr.msk.bf16.mxu1 %vm2272_vm0, %v2271_v0 }
0x1667   :  { %2029 = vmatprep.subr.bf16.mxu1 %v2271_v0 }
0x166a   :  { %2030 = vmatpush3.bf16.msra.mxu1 %v2371_v53 }
0x1671   :  { %2032 = vmatmul.mubr.msk.bf16.vlgmr.msra.gmra.mrb[32].mxu1 %vm131_vm3, %v1581_v16 }
0x1744   :  { %v1619_v18 = vpop.f32.mrb[32].mxu1 }
0x1745   :  { %v2050_v21 = vadd.f32 %v2219_v19, %v1619_v18  ;;  %v2033_v22 = vpop.f32.mrb[33].mxu1 }
0x1746   :  { %v1622_v23 = vpop.f32.mrb[34].mxu1 }
0x1747   :  { %2211 = vtanh.f32 %v2050_v21  ;;  %v2034_v24 = vpop.f32.mrb[35].mxu1  ;;  %v1758_v49 = vmul.f32 -1.442695, %v2050_v21 }
0x1749   :  { %2213 = vpow2.f32 %v1758_v49 }
0x1751   :  { %v2212_v25 = vpop.eup %2211 }
0x1752   :  { %1634 = vrot.lane.b32.xlu0 %v2212_v25, %s2273_s0 }
0x1753   :  { %v2214_v26 = vpop.eup %2213 }
0x1754   :  { %v1628_v27 = vadd.f32 1.0, %v2214_v26 }
0x1756   :  { %2215 = vrcp.f32 %v1628_v27 }
0x1760   :  { %v2216_v28 = vpop.eup %2215 }
0x1761   :  { %v1632_v31 = vmul.f32 %v2216_v28, %v1452_v5 }
0x17c4   :  { %v1635_v53 = vpop.permute.xlu0 %1634 }
0x17c5   :  { %v1637_v29 = vmul.f32 %v2216_v28, %v1635_v53 }
0x17c7   :  { %1639 = vrot.lane.b32.xlu1 %v1637_v29, %s2274_s6 }
0x1839   :  { %v1640_v30 = vpop.permute.xlu1 %1639 }
0x183a   :  { %v1642_v32 = vadd.f32 %v1640_v30, %v1632_v31 }
0x183c   :  { %2217 = vtanh.f32 %v1642_v32 }
0x1846   :  { %v2218_v37 = vpop.eup %2217 }
0x1847   :  { %1645 = vrot.lane.b32.xlu0 %v2218_v37, %s2273_s0 }
0x18b9   :  { %v1646_v38 = vpop.permute.xlu0 %1645 }
0x18ba   :  { %v1648_v39 = vmul.f32 %v2216_v28, %v1646_v38 }
0x18bc   :  { %v1649_v40 = vpack.c.bf16 %v1648_v39, %v1648_v39 }
0x18be   :  { %1651 = vrot.lane.b32.xlu1 %v1649_v40, %s2274_s6 }
0x1930   :  { %v1652_v41 = vpop.permute.xlu1 %1651 }
0x1931   :  { %2040 = vmatmul.mubr.msk.bf16.vlgmr.msra.gmra.mrb[32].mxu0 %vm131_vm3, %v1652_v41 }
0x1a04   :  { %v1690_v45 = vpop.f32.mrb[32].mxu0 }
0x1a05   :  { %v1691_v46 = vadd.f32 %v1713_v43, %v1690_v45  ;;  %v2041_v47 = vpop.f32.mrb[33].mxu0 }
0x1a06   :  { %v1693_v0 = vpop.f32.mrb[34].mxu0 }
0x1a07   :  { %1696 = vst [vmem:[#allocation5] sm:$0x3] %v1691_v46  ;;  %v2042_v48 = vpop.f32.mrb[35].mxu0 }
0x1a08   :  { %2253 = shalt.err (!%p2250_p12)
}
0x1a09   :  { %s2254_s15 = scalar_lea.hbm %s2668_s3, 32 }
0x1a0a   :  { %p2255_p13 = scmp.ne.s32.totalorder %s2668_s3, %s2254_s15  ;;  %p2258_p0 = scmp.lt.u32.totalorder %s2254_s15, %s2668_s3 }
0x1a0c   :  { %p2260_p1 = pnand %p2258_p0, %p2255_p13 }
0x1a0e   :  { %2263 = shalt.err (!%p2260_p1)
}
0x1a0f   :  { %1706 = dma.vmem_to_hbm [thread:$0]  %s1704_s11, 32, %s2668_s3, [#allocation4]  }
0x1a10   :  { %2266 = dma.done.wait [#allocation4], 32  }
0x1a11   :  { %2267 = vsyncadd [#allocation4], 4294967264 }
0x1a12   :  { %1710 = vsyncpa [#allocation3], 1 }
0x1a13   :  { %1711 = vsyncpa [#allocation4], 1 }

</bundles_post_ra>
